<compile_context>
chip_gen: v6e
topology: v6e:2x2x1
jax: 0.10.0
libtpu: 0.0.40
codegen_flags: <defaults>
</compile_context>

<pallas_src>
import functools
import math

import jax
import jax.numpy as jnp
import numpy as np
from jax import lax
from jax.experimental import pallas as pl
from jax.experimental.pallas import tpu as pltpu

EPS = 1e-5  # PyTorch LayerNorm default eps


# ----------------------------- in-kernel helpers -----------------------------
def _layernorm(x, gamma, beta):
    mean = jnp.mean(x, axis=-1, keepdims=True)
    var = jnp.mean((x - mean) ** 2, axis=-1, keepdims=True)
    return (x - mean) * lax.rsqrt(var + EPS) * gamma + beta


# --------------------------------- kernel ------------------------------------
def fused_kernel(num_heads,
                 x_ref, ew_ref, eb_ref,
                 wq_ref, bq_ref, wk_ref, bk_ref, wv_ref, bv_ref,
                 wo_ref, bo_ref, g1_ref, b1_ref,
                 w1_ref, bb1_ref, w2_ref, bb2_ref, g2_ref, b2_ref,
                 fg_ref, fb_ref, o_ref):
    """One grid step = (one batch element) x (one encoder layer)."""
    l = pl.program_id(1)
    n_layers = pl.num_programs(1)

    # Layer 0: run the feature extractor and park the activation in the
    # resident output block (constant block index across the layer axis, so it
    # never leaves VMEM until the last layer has written it).
    @pl.when(l == 0)
    def _():
        o_ref[...] = (
            jnp.dot(x_ref[...].astype(jnp.bfloat16), ew_ref[...],
                    preferred_element_type=jnp.float32) + eb_ref[...])

    x = o_ref[...]                               # (S, D) float32, resident
    xb = x.astype(jnp.bfloat16)

    s_len, d_model = x.shape
    dh = d_model // num_heads
    scale = 1.0 / math.sqrt(dh)

    # --- self attention: separate q/k/v projections (no 3*D lane slicing) ---
    q = jnp.dot(xb, wq_ref[...], preferred_element_type=jnp.float32) + bq_ref[...]
    k = jnp.dot(xb, wk_ref[...], preferred_element_type=jnp.float32) + bk_ref[...]
    v = jnp.dot(xb, wv_ref[...], preferred_element_type=jnp.float32) + bv_ref[...]

    # Per-head attention; heads unrolled statically (num_heads is small).  The
    # output projection is accumulated per head (sum_h ctx_h @ Wo[h-rows]) --
    # mathematically identical to concat+single-dot, but avoids minor-dim
    # concatenation of tiny lane-sparse tiles.  Attention math stays f32.
    attn = jnp.zeros((s_len, d_model), dtype=jnp.float32)
    for h in range(num_heads):
        lo = h * dh
        qh = q[:, lo:lo + dh] * scale            # (S, dh)
        kh = k[:, lo:lo + dh]
        vh = v[:, lo:lo + dh]
        scores = lax.dot_general(                # (S, S)
            qh, kh, (((1,), (1,)), ((), ())),
            preferred_element_type=jnp.float32)
        m = jnp.max(scores, axis=-1, keepdims=True)
        e = jnp.exp(scores - m)
        probs = e * pl.reciprocal(jnp.sum(e, axis=-1, keepdims=True), approx=True)
        ctx_h = jnp.dot(probs, vh, preferred_element_type=jnp.float32)   # (S, dh)
        attn = attn + jnp.dot(ctx_h.astype(jnp.bfloat16), wo_ref[lo:lo + dh, :],
                              preferred_element_type=jnp.float32)
    attn = attn + bo_ref[...]

    # residual + norm1 (dropout is identity in eval mode)
    x1 = _layernorm(x + attn, g1_ref[...], b1_ref[...])

    # --- feed forward: Linear -> ReLU -> Linear (bf16 weights, f32 accum) ---
    h1 = jnp.maximum(
        jnp.dot(x1.astype(jnp.bfloat16), w1_ref[...],
                preferred_element_type=jnp.float32) + bb1_ref[...], 0.0)
    ff = jnp.dot(h1.astype(jnp.bfloat16), w2_ref[...],
                 preferred_element_type=jnp.float32) + bb2_ref[...]

    # residual + norm2
    y = _layernorm(x1 + ff, g2_ref[...], b2_ref[...])

    @pl.when(l < n_layers - 1)
    def _():
        o_ref[...] = y

    # last layer: also apply the encoder's final LayerNorm before writeback
    @pl.when(l == n_layers - 1)
    def _():
        o_ref[...] = _layernorm(y, fg_ref[...], fb_ref[...])


# -------------------------------- wrapper ------------------------------------
@functools.partial(jax.jit, static_argnums=2)
def forward(x, params, num_heads):
    B, S, F = x.shape
    D = params["ext_w"].shape[1]
    L = params["wq"].shape[0]
    FF = params["w1"].shape[2]
    bf = jnp.bfloat16

    def full2(shape):
        return pl.BlockSpec(shape, lambda b, l: (0, 0))

    def per_layer(shape):
        # leading layer dim squeezed out; index_map selects this layer's slice
        return pl.BlockSpec((None,) + tuple(shape), lambda b, l: (l, 0, 0))

    kernel = functools.partial(fused_kernel, num_heads)
    return pl.pallas_call(
        kernel,
        out_shape=jax.ShapeDtypeStruct((B, S, D), jnp.float32),
        grid=(B, L),
        in_specs=[
            pl.BlockSpec((None, S, F), lambda b, l: (b, 0, 0)),   # x
            full2((F, D)), full2((1, D)),                          # extractor
            per_layer((D, D)), per_layer((1, D)),                  # wq, bq
            per_layer((D, D)), per_layer((1, D)),                  # wk, bk
            per_layer((D, D)), per_layer((1, D)),                  # wv, bv
            per_layer((D, D)), per_layer((1, D)),                  # wo, bo
            per_layer((1, D)), per_layer((1, D)),                  # g1, b1
            per_layer((D, FF)), per_layer((1, FF)),                # w1, bb1
            per_layer((FF, D)), per_layer((1, D)),                 # w2, bb2
            per_layer((1, D)), per_layer((1, D)),                  # g2, b2
            full2((1, D)), full2((1, D)),                          # final g, b
        ],
        out_specs=pl.BlockSpec((None, S, D), lambda b, l: (b, 0, 0)),
        compiler_params=pltpu.CompilerParams(
            dimension_semantics=("parallel", "arbitrary")),
    )(
        x,
        params["ext_w"].astype(bf), params["ext_b"],
        params["wq"].astype(bf), params["bq"],
        params["wk"].astype(bf), params["bk"],
        params["wv"].astype(bf), params["bv"],
        params["wo"].astype(bf), params["bo"],
        params["g1"], params["b1"],
        params["w1"].astype(bf), params["bb1"],
        params["w2"].astype(bf), params["bb2"],
        params["g2"], params["b2"],
        params["final_g"], params["final_b"],
    )


# ---------------------------- parameter creation ------------------------------
def init_params(key, in_features, hidden, num_layers, ff_dim):
    ks = jax.random.split(key, 14)
    s = 0.05
    L = num_layers

    def rnd(k, shape):
        return s * jax.random.normal(k, shape, jnp.float32)

    return {
        "ext_w": rnd(ks[0], (in_features, hidden)),
        "ext_b": rnd(ks[1], (1, hidden)),
        "wq": rnd(ks[2], (L, hidden, hidden)),
        "bq": rnd(ks[3], (L, 1, hidden)),
        "wk": rnd(ks[4], (L, hidden, hidden)),
        "bk": rnd(ks[5], (L, 1, hidden)),
        "wv": rnd(ks[6], (L, hidden, hidden)),
        "bv": rnd(ks[7], (L, 1, hidden)),
        "wo": rnd(ks[8], (L, hidden, hidden)),
        "bo": rnd(ks[9], (L, 1, hidden)),
        "g1": jnp.ones((L, 1, hidden), jnp.float32),
        "b1": jnp.zeros((L, 1, hidden), jnp.float32),
        "w1": rnd(ks[10], (L, hidden, ff_dim)),
        "bb1": rnd(ks[11], (L, 1, ff_dim)),
        "w2": rnd(ks[12], (L, ff_dim, hidden)),
        "bb2": rnd(ks[13], (L, 1, hidden)),
        "g2": jnp.ones((L, 1, hidden), jnp.float32),
        "b2": jnp.zeros((L, 1, hidden), jnp.float32),
        "final_g": jnp.ones((1, hidden), jnp.float32),
        "final_b": jnp.zeros((1, hidden), jnp.float32),
    }


# ------------------------------ pure-JAX reference ----------------------------
def reference_forward(x, params, num_heads):
    bf, f32 = jnp.bfloat16, jnp.float32

    def mm(a, w):  # same bf16-operand / f32-accumulate semantics as the kernel
        return jnp.einsum("...k,kd->...d", a.astype(bf), w.astype(bf),
                          preferred_element_type=f32)

    def ln(y, g, b):
        m = y.mean(-1, keepdims=True)
        v = ((y - m) ** 2).mean(-1, keepdims=True)
        return (y - m) / jnp.sqrt(v + EPS) * g + b

    feat = mm(x, params["ext_w"]) + params["ext_b"]
    B, S, D = feat.shape
    dh = D // num_heads
    L = params["wq"].shape[0]
    for i in range(L):
        q = mm(feat, params["wq"][i]) + params["bq"][i]
        k = mm(feat, params["wk"][i]) + params["bk"][i]
        v = mm(feat, params["wv"][i]) + params["bv"][i]
        qh = q.reshape(B, S, num_heads, dh).transpose(0, 2, 1, 3)
        kh = k.reshape(B, S, num_heads, dh).transpose(0, 2, 1, 3)
        vh = v.reshape(B, S, num_heads, dh).transpose(0, 2, 1, 3)
        scores = (qh / math.sqrt(dh)) @ jnp.swapaxes(kh, -1, -2)
        probs = jax.nn.softmax(scores, axis=-1)
        ctx = (probs @ vh).transpose(0, 2, 1, 3).reshape(B, S, D)
        attn = mm(ctx, params["wo"][i]) + params["bo"][i]
        feat = ln(feat + attn, params["g1"][i], params["b1"][i])
        h = jax.nn.relu(mm(feat, params["w1"][i]) + params["bb1"][i])
        ff = mm(h, params["w2"][i]) + params["bb2"][i]
        feat = ln(feat + ff, params["g2"][i], params["b2"][i])
    return ln(feat, params["final_g"], params["final_b"])


# ----------------------------------- main -------------------------------------
if __name__ == "__main__":
    # batch=2, seq=8, extractor input feature=64, hidden=32, heads=4,
    # layers=2, dim_feedforward=2048 (PyTorch default)
    B, S, F = 2, 8, 64
    HIDDEN, HEADS, LAYERS, FF = 32, 4, 2, 2048

    x = jax.random.normal(jax.random.PRNGKey(0), (B, S, F), dtype=jnp.float32)
    params = init_params(jax.random.PRNGKey(42), F, HIDDEN, LAYERS, FF)

    out = forward(x, params, HEADS)
    out = jax.block_until_ready(out)
    assert out.shape == (B, S, HIDDEN)

    ref = reference_forward(x, params, HEADS)
    np.testing.assert_allclose(np.asarray(out, dtype=np.float32),
                               np.asarray(ref, dtype=np.float32),
                               atol=5e-3, rtol=5e-3)

    print("KERNEL_OK")
</pallas_src>

<mosaic_0001>
module attributes {stable_mosaic.version = 11 : i64} {
  func.func @fused_kernel(%arg0: i32, %arg1: i32, %arg2: memref<1x8x64xf32, #tpu.memory_space<vmem>>, %arg3: memref<64x32xbf16, #tpu.memory_space<vmem>>, %arg4: memref<1x32xf32, #tpu.memory_space<vmem>>, %arg5: memref<1x32x32xbf16, #tpu.memory_space<vmem>>, %arg6: memref<1x1x32xf32, #tpu.memory_space<vmem>>, %arg7: memref<1x32x32xbf16, #tpu.memory_space<vmem>>, %arg8: memref<1x1x32xf32, #tpu.memory_space<vmem>>, %arg9: memref<1x32x32xbf16, #tpu.memory_space<vmem>>, %arg10: memref<1x1x32xf32, #tpu.memory_space<vmem>>, %arg11: memref<1x32x32xbf16, #tpu.memory_space<vmem>>, %arg12: memref<1x1x32xf32, #tpu.memory_space<vmem>>, %arg13: memref<1x1x32xf32, #tpu.memory_space<vmem>>, %arg14: memref<1x1x32xf32, #tpu.memory_space<vmem>>, %arg15: memref<1x32x2048xbf16, #tpu.memory_space<vmem>>, %arg16: memref<1x1x2048xf32, #tpu.memory_space<vmem>>, %arg17: memref<1x2048x32xbf16, #tpu.memory_space<vmem>>, %arg18: memref<1x1x32xf32, #tpu.memory_space<vmem>>, %arg19: memref<1x1x32xf32, #tpu.memory_space<vmem>>, %arg20: memref<1x1x32xf32, #tpu.memory_space<vmem>>, %arg21: memref<1x32xf32, #tpu.memory_space<vmem>>, %arg22: memref<1x32xf32, #tpu.memory_space<vmem>>, %arg23: memref<1x8x32xf32, #tpu.memory_space<vmem>>) attributes {dimension_semantics = [#tpu.dimension_semantics<parallel>, #tpu.dimension_semantics<arbitrary>], iteration_bounds = array<i64: 2, 2>, scalar_prefetch = 0 : i64, scratch_operands = 0 : i64, tpu.core_type = #tpu.core_type<tc>, window_params = [{transform_indices = @transform_0, window_bounds = array<i64: 1, 8, 64>}, {pipeline_mode = #tpu.pipeline_mode<synchronous>, transform_indices = @transform_1, window_bounds = array<i64: 64, 32>}, {pipeline_mode = #tpu.pipeline_mode<synchronous>, transform_indices = @transform_2, window_bounds = array<i64: 1, 32>}, {transform_indices = @transform_3, window_bounds = array<i64: 1, 32, 32>}, {transform_indices = @transform_4, window_bounds = array<i64: 1, 1, 32>}, {transform_indices = @transform_5, window_bounds = array<i64: 1, 32, 32>}, {transform_indices = @transform_6, window_bounds = array<i64: 1, 1, 32>}, {transform_indices = @transform_7, window_bounds = array<i64: 1, 32, 32>}, {transform_indices = @transform_8, window_bounds = array<i64: 1, 1, 32>}, {transform_indices = @transform_9, window_bounds = array<i64: 1, 32, 32>}, {transform_indices = @transform_10, window_bounds = array<i64: 1, 1, 32>}, {transform_indices = @transform_11, window_bounds = array<i64: 1, 1, 32>}, {transform_indices = @transform_12, window_bounds = array<i64: 1, 1, 32>}, {transform_indices = @transform_13, window_bounds = array<i64: 1, 32, 2048>}, {transform_indices = @transform_14, window_bounds = array<i64: 1, 1, 2048>}, {transform_indices = @transform_15, window_bounds = array<i64: 1, 2048, 32>}, {transform_indices = @transform_16, window_bounds = array<i64: 1, 1, 32>}, {transform_indices = @transform_17, window_bounds = array<i64: 1, 1, 32>}, {transform_indices = @transform_18, window_bounds = array<i64: 1, 1, 32>}, {pipeline_mode = #tpu.pipeline_mode<synchronous>, transform_indices = @transform_19, window_bounds = array<i64: 1, 32>}, {pipeline_mode = #tpu.pipeline_mode<synchronous>, transform_indices = @transform_20, window_bounds = array<i64: 1, 32>}, {transform_indices = @transform_21, window_bounds = array<i64: 1, 8, 32>}]} {
    %c0_i32 = arith.constant 0 : i32
    %0 = arith.cmpi eq, %arg1, %c0_i32 : i32
    %1 = arith.extui %0 : i1 to i32
    %c0_i32_0 = arith.constant 0 : i32
    %2 = arith.cmpi ne, %1, %c0_i32_0 : i32
    scf.if %2 {
      %c0_100 = arith.constant 0 : index
      %c0_101 = arith.constant 0 : index
      %c0_102 = arith.constant 0 : index
      %198 = vector.load %arg2[%c0_100, %c0_101, %c0_102] : memref<1x8x64xf32, #tpu.memory_space<vmem>>, vector<1x8x64xf32>
      %199 = vector.shape_cast %198 : vector<1x8x64xf32> to vector<8x64xf32>
      %200 = arith.truncf %199 : vector<8x64xf32> to vector<8x64xbf16>
      %c0_103 = arith.constant 0 : index
      %c0_104 = arith.constant 0 : index
      %201 = vector.load %arg3[%c0_103, %c0_104] : memref<64x32xbf16, #tpu.memory_space<vmem>>, vector<64x32xbf16>
      %cst_105 = arith.constant dense<0.000000e+00> : vector<8x32xf32>
      %202 = tpu.matmul %200, %201, %cst_105 {dimension_numbers = #tpu.dot_dimension_numbers<[1], [0], [0], [1], [0, 0, 1, 1], [], []>} : vector<8x64xbf16>, vector<64x32xbf16>, vector<8x32xf32> -> vector<8x32xf32>
      %c0_106 = arith.constant 0 : index
      %c0_107 = arith.constant 0 : index
      %203 = vector.load %arg4[%c0_106, %c0_107] : memref<1x32xf32, #tpu.memory_space<vmem>>, vector<1x32xf32>
      %204 = vector.broadcast %203 : vector<1x32xf32> to vector<8x32xf32>
      %205 = arith.addf %202, %204 : vector<8x32xf32>
      %c0_108 = arith.constant 0 : index
      %c0_109 = arith.constant 0 : index
      %c0_110 = arith.constant 0 : index
      %206 = vector.load %arg23[%c0_108, %c0_109, %c0_110] : memref<1x8x32xf32, #tpu.memory_space<vmem>>, vector<1x8x32xf32>
      %207 = vector.shape_cast %206 : vector<1x8x32xf32> to vector<8x32xf32>
      %208 = vector.shape_cast %205 : vector<8x32xf32> to vector<1x8x32xf32>
      tpu.vector_store %arg23[%c0_108, %c0_109, %c0_110], %208 {strides = array<i32>} : memref<1x8x32xf32, #tpu.memory_space<vmem>>, vector<1x8x32xf32>,
    } else {
    }
    %c0 = arith.constant 0 : index
    %c0_1 = arith.constant 0 : index
    %c0_2 = arith.constant 0 : index
    %3 = vector.load %arg23[%c0, %c0_1, %c0_2] : memref<1x8x32xf32, #tpu.memory_space<vmem>>, vector<1x8x32xf32>
    %4 = vector.shape_cast %3 : vector<1x8x32xf32> to vector<8x32xf32>
    %5 = arith.truncf %4 : vector<8x32xf32> to vector<8x32xbf16>
    %c0_3 = arith.constant 0 : index
    %c0_4 = arith.constant 0 : index
    %c0_5 = arith.constant 0 : index
    %6 = vector.load %arg5[%c0_3, %c0_4, %c0_5] : memref<1x32x32xbf16, #tpu.memory_space<vmem>>, vector<1x32x32xbf16>
    %7 = vector.shape_cast %6 : vector<1x32x32xbf16> to vector<32x32xbf16>
    %cst = arith.constant dense<0.000000e+00> : vector<8x32xf32>
    %8 = tpu.matmul %5, %7, %cst {dimension_numbers = #tpu.dot_dimension_numbers<[1], [0], [0], [1], [0, 0, 1, 1], [], []>} : vector<8x32xbf16>, vector<32x32xbf16>, vector<8x32xf32> -> vector<8x32xf32>
    %c0_6 = arith.constant 0 : index
    %c0_7 = arith.constant 0 : index
    %c0_8 = arith.constant 0 : index
    %9 = vector.load %arg6[%c0_6, %c0_7, %c0_8] : memref<1x1x32xf32, #tpu.memory_space<vmem>>, vector<1x1x32xf32>
    %10 = vector.shape_cast %9 : vector<1x1x32xf32> to vector<1x32xf32>
    %11 = vector.broadcast %10 : vector<1x32xf32> to vector<8x32xf32>
    %12 = arith.addf %8, %11 : vector<8x32xf32>
    %c0_9 = arith.constant 0 : index
    %c0_10 = arith.constant 0 : index
    %c0_11 = arith.constant 0 : index
    %13 = vector.load %arg7[%c0_9, %c0_10, %c0_11] : memref<1x32x32xbf16, #tpu.memory_space<vmem>>, vector<1x32x32xbf16>
    %14 = vector.shape_cast %13 : vector<1x32x32xbf16> to vector<32x32xbf16>
    %cst_12 = arith.constant dense<0.000000e+00> : vector<8x32xf32>
    %15 = tpu.matmul %5, %14, %cst_12 {dimension_numbers = #tpu.dot_dimension_numbers<[1], [0], [0], [1], [0, 0, 1, 1], [], []>} : vector<8x32xbf16>, vector<32x32xbf16>, vector<8x32xf32> -> vector<8x32xf32>
    %c0_13 = arith.constant 0 : index
    %c0_14 = arith.constant 0 : index
    %c0_15 = arith.constant 0 : index
    %16 = vector.load %arg8[%c0_13, %c0_14, %c0_15] : memref<1x1x32xf32, #tpu.memory_space<vmem>>, vector<1x1x32xf32>
    %17 = vector.shape_cast %16 : vector<1x1x32xf32> to vector<1x32xf32>
    %18 = vector.broadcast %17 : vector<1x32xf32> to vector<8x32xf32>
    %19 = arith.addf %15, %18 : vector<8x32xf32>
    %c0_16 = arith.constant 0 : index
    %c0_17 = arith.constant 0 : index
    %c0_18 = arith.constant 0 : index
    %20 = vector.load %arg9[%c0_16, %c0_17, %c0_18] : memref<1x32x32xbf16, #tpu.memory_space<vmem>>, vector<1x32x32xbf16>
    %21 = vector.shape_cast %20 : vector<1x32x32xbf16> to vector<32x32xbf16>
    %cst_19 = arith.constant dense<0.000000e+00> : vector<8x32xf32>
    %22 = tpu.matmul %5, %21, %cst_19 {dimension_numbers = #tpu.dot_dimension_numbers<[1], [0], [0], [1], [0, 0, 1, 1], [], []>} : vector<8x32xbf16>, vector<32x32xbf16>, vector<8x32xf32> -> vector<8x32xf32>
    %c0_20 = arith.constant 0 : index
    %c0_21 = arith.constant 0 : index
    %c0_22 = arith.constant 0 : index
    %23 = vector.load %arg10[%c0_20, %c0_21, %c0_22] : memref<1x1x32xf32, #tpu.memory_space<vmem>>, vector<1x1x32xf32>
    %24 = vector.shape_cast %23 : vector<1x1x32xf32> to vector<1x32xf32>
    %25 = vector.broadcast %24 : vector<1x32xf32> to vector<8x32xf32>
    %26 = arith.addf %22, %25 : vector<8x32xf32>
    %cst_23 = arith.constant 0.000000e+00 : f32
    %27 = vector.broadcast %cst_23 : f32 to vector<8x32xf32>
    %28 = vector.extract_strided_slice %12 {offsets = [0, 0], sizes = [8, 8], strides = [1, 1]} : vector<8x32xf32> to vector<8x8xf32>
    %cst_24 = arith.constant 0.353553385 : f32
    %29 = vector.broadcast %cst_24 : f32 to vector<8x8xf32>
    %30 = arith.mulf %28, %29 : vector<8x8xf32>
    %31 = vector.extract_strided_slice %19 {offsets = [0, 0], sizes = [8, 8], strides = [1, 1]} : vector<8x32xf32> to vector<8x8xf32>
    %32 = vector.extract_strided_slice %26 {offsets = [0, 0], sizes = [8, 8], strides = [1, 1]} : vector<8x32xf32> to vector<8x8xf32>
    %cst_25 = arith.constant dense<0.000000e+00> : vector<8x8xf32>
    %33 = tpu.matmul %30, %31, %cst_25 {dimension_numbers = #tpu.dot_dimension_numbers<[1], [1], [0], [0], [0, 0, 1, 0], [], []>} : vector<8x8xf32>, vector<8x8xf32>, vector<8x8xf32> -> vector<8x8xf32>
    %cst_26 = arith.constant dense<0xFF800000> : vector<8xf32>
    %34 = vector.multi_reduction <maximumf>, %33, %cst_26 [1] : vector<8x8xf32> to vector<8xf32>
    %35 = vector.shape_cast %34 : vector<8xf32> to vector<8x1xf32>
    %36 = vector.broadcast %35 : vector<8x1xf32> to vector<8x8xf32>
    %37 = arith.subf %33, %36 : vector<8x8xf32>
    %38 = math.exp %37 : vector<8x8xf32>
    %cst_27 = arith.constant dense<0.000000e+00> : vector<8xf32>
    %39 = vector.multi_reduction <add>, %38, %cst_27 [1] : vector<8x8xf32> to vector<8xf32>
    %40 = vector.shape_cast %39 : vector<8xf32> to vector<8x1xf32>
    %41 = tpu.reciprocal %40 {approx = true} : vector<8x1xf32> -> vector<8x1xf32>
    %42 = vector.broadcast %41 : vector<8x1xf32> to vector<8x8xf32>
    %43 = arith.mulf %38, %42 : vector<8x8xf32>
    %cst_28 = arith.constant dense<0.000000e+00> : vector<8x8xf32>
    %44 = tpu.matmul %43, %32, %cst_28 {dimension_numbers = #tpu.dot_dimension_numbers<[1], [0], [0], [1], [0, 0, 1, 1], [], []>} : vector<8x8xf32>, vector<8x8xf32>, vector<8x8xf32> -> vector<8x8xf32>
    %45 = arith.truncf %44 : vector<8x8xf32> to vector<8x8xbf16>
    %c0_29 = arith.constant 0 : index
    %c0_30 = arith.constant 0 : index
    %c0_31 = arith.constant 0 : index
    %46 = vector.load %arg11[%c0_29, %c0_30, %c0_31] : memref<1x32x32xbf16, #tpu.memory_space<vmem>>, vector<1x8x32xbf16>
    %47 = vector.shape_cast %46 : vector<1x8x32xbf16> to vector<8x32xbf16>
    %cst_32 = arith.constant dense<0.000000e+00> : vector<8x32xf32>
    %48 = tpu.matmul %45, %47, %cst_32 {dimension_numbers = #tpu.dot_dimension_numbers<[1], [0], [0], [1], [0, 0, 1, 1], [], []>} : vector<8x8xbf16>, vector<8x32xbf16>, vector<8x32xf32> -> vector<8x32xf32>
    %49 = arith.addf %27, %48 : vector<8x32xf32>
    %50 = vector.extract_strided_slice %12 {offsets = [0, 8], sizes = [8, 8], strides = [1, 1]} : vector<8x32xf32> to vector<8x8xf32>
    %cst_33 = arith.constant 0.353553385 : f32
    %51 = vector.broadcast %cst_33 : f32 to vector<8x8xf32>
    %52 = arith.mulf %50, %51 : vector<8x8xf32>
    %53 = vector.extract_strided_slice %19 {offsets = [0, 8], sizes = [8, 8], strides = [1, 1]} : vector<8x32xf32> to vector<8x8xf32>
    %54 = vector.extract_strided_slice %26 {offsets = [0, 8], sizes = [8, 8], strides = [1, 1]} : vector<8x32xf32> to vector<8x8xf32>
    %cst_34 = arith.constant dense<0.000000e+00> : vector<8x8xf32>
    %55 = tpu.matmul %52, %53, %cst_34 {dimension_numbers = #tpu.dot_dimension_numbers<[1], [1], [0], [0], [0, 0, 1, 0], [], []>} : vector<8x8xf32>, vector<8x8xf32>, vector<8x8xf32> -> vector<8x8xf32>
    %cst_35 = arith.constant dense<0xFF800000> : vector<8xf32>
    %56 = vector.multi_reduction <maximumf>, %55, %cst_35 [1] : vector<8x8xf32> to vector<8xf32>
    %57 = vector.shape_cast %56 : vector<8xf32> to vector<8x1xf32>
    %58 = vector.broadcast %57 : vector<8x1xf32> to vector<8x8xf32>
    %59 = arith.subf %55, %58 : vector<8x8xf32>
    %60 = math.exp %59 : vector<8x8xf32>
    %cst_36 = arith.constant dense<0.000000e+00> : vector<8xf32>
    %61 = vector.multi_reduction <add>, %60, %cst_36 [1] : vector<8x8xf32> to vector<8xf32>
    %62 = vector.shape_cast %61 : vector<8xf32> to vector<8x1xf32>
    %63 = tpu.reciprocal %62 {approx = true} : vector<8x1xf32> -> vector<8x1xf32>
    %64 = vector.broadcast %63 : vector<8x1xf32> to vector<8x8xf32>
    %65 = arith.mulf %60, %64 : vector<8x8xf32>
    %cst_37 = arith.constant dense<0.000000e+00> : vector<8x8xf32>
    %66 = tpu.matmul %65, %54, %cst_37 {dimension_numbers = #tpu.dot_dimension_numbers<[1], [0], [0], [1], [0, 0, 1, 1], [], []>} : vector<8x8xf32>, vector<8x8xf32>, vector<8x8xf32> -> vector<8x8xf32>
    %67 = arith.truncf %66 : vector<8x8xf32> to vector<8x8xbf16>
    %c0_38 = arith.constant 0 : index
    %c8 = arith.constant 8 : index
    %c0_39 = arith.constant 0 : index
    %68 = vector.load %arg11[%c0_38, %c8, %c0_39] : memref<1x32x32xbf16, #tpu.memory_space<vmem>>, vector<1x8x32xbf16>
    %69 = vector.shape_cast %68 : vector<1x8x32xbf16> to vector<8x32xbf16>
    %cst_40 = arith.constant dense<0.000000e+00> : vector<8x32xf32>
    %70 = tpu.matmul %67, %69, %cst_40 {dimension_numbers = #tpu.dot_dimension_numbers<[1], [0], [0], [1], [0, 0, 1, 1], [], []>} : vector<8x8xbf16>, vector<8x32xbf16>, vector<8x32xf32> -> vector<8x32xf32>
    %71 = arith.addf %49, %70 : vector<8x32xf32>
    %72 = vector.extract_strided_slice %12 {offsets = [0, 16], sizes = [8, 8], strides = [1, 1]} : vector<8x32xf32> to vector<8x8xf32>
    %cst_41 = arith.constant 0.353553385 : f32
    %73 = vector.broadcast %cst_41 : f32 to vector<8x8xf32>
    %74 = arith.mulf %72, %73 : vector<8x8xf32>
    %75 = vector.extract_strided_slice %19 {offsets = [0, 16], sizes = [8, 8], strides = [1, 1]} : vector<8x32xf32> to vector<8x8xf32>
    %76 = vector.extract_strided_slice %26 {offsets = [0, 16], sizes = [8, 8], strides = [1, 1]} : vector<8x32xf32> to vector<8x8xf32>
    %cst_42 = arith.constant dense<0.000000e+00> : vector<8x8xf32>
    %77 = tpu.matmul %74, %75, %cst_42 {dimension_numbers = #tpu.dot_dimension_numbers<[1], [1], [0], [0], [0, 0, 1, 0], [], []>} : vector<8x8xf32>, vector<8x8xf32>, vector<8x8xf32> -> vector<8x8xf32>
    %cst_43 = arith.constant dense<0xFF800000> : vector<8xf32>
    %78 = vector.multi_reduction <maximumf>, %77, %cst_43 [1] : vector<8x8xf32> to vector<8xf32>
    %79 = vector.shape_cast %78 : vector<8xf32> to vector<8x1xf32>
    %80 = vector.broadcast %79 : vector<8x1xf32> to vector<8x8xf32>
    %81 = arith.subf %77, %80 : vector<8x8xf32>
    %82 = math.exp %81 : vector<8x8xf32>
    %cst_44 = arith.constant dense<0.000000e+00> : vector<8xf32>
    %83 = vector.multi_reduction <add>, %82, %cst_44 [1] : vector<8x8xf32> to vector<8xf32>
    %84 = vector.shape_cast %83 : vector<8xf32> to vector<8x1xf32>
    %85 = tpu.reciprocal %84 {approx = true} : vector<8x1xf32> -> vector<8x1xf32>
    %86 = vector.broadcast %85 : vector<8x1xf32> to vector<8x8xf32>
    %87 = arith.mulf %82, %86 : vector<8x8xf32>
    %cst_45 = arith.constant dense<0.000000e+00> : vector<8x8xf32>
    %88 = tpu.matmul %87, %76, %cst_45 {dimension_numbers = #tpu.dot_dimension_numbers<[1], [0], [0], [1], [0, 0, 1, 1], [], []>} : vector<8x8xf32>, vector<8x8xf32>, vector<8x8xf32> -> vector<8x8xf32>
    %89 = arith.truncf %88 : vector<8x8xf32> to vector<8x8xbf16>
    %c0_46 = arith.constant 0 : index
    %c16 = arith.constant 16 : index
    %c0_47 = arith.constant 0 : index
    %90 = vector.load %arg11[%c0_46, %c16, %c0_47] : memref<1x32x32xbf16, #tpu.memory_space<vmem>>, vector<1x8x32xbf16>
    %91 = vector.shape_cast %90 : vector<1x8x32xbf16> to vector<8x32xbf16>
    %cst_48 = arith.constant dense<0.000000e+00> : vector<8x32xf32>
    %92 = tpu.matmul %89, %91, %cst_48 {dimension_numbers = #tpu.dot_dimension_numbers<[1], [0], [0], [1], [0, 0, 1, 1], [], []>} : vector<8x8xbf16>, vector<8x32xbf16>, vector<8x32xf32> -> vector<8x32xf32>
    %93 = arith.addf %71, %92 : vector<8x32xf32>
    %94 = vector.extract_strided_slice %12 {offsets = [0, 24], sizes = [8, 8], strides = [1, 1]} : vector<8x32xf32> to vector<8x8xf32>
    %cst_49 = arith.constant 0.353553385 : f32
    %95 = vector.broadcast %cst_49 : f32 to vector<8x8xf32>
    %96 = arith.mulf %94, %95 : vector<8x8xf32>
    %97 = vector.extract_strided_slice %19 {offsets = [0, 24], sizes = [8, 8], strides = [1, 1]} : vector<8x32xf32> to vector<8x8xf32>
    %98 = vector.extract_strided_slice %26 {offsets = [0, 24], sizes = [8, 8], strides = [1, 1]} : vector<8x32xf32> to vector<8x8xf32>
    %cst_50 = arith.constant dense<0.000000e+00> : vector<8x8xf32>
    %99 = tpu.matmul %96, %97, %cst_50 {dimension_numbers = #tpu.dot_dimension_numbers<[1], [1], [0], [0], [0, 0, 1, 0], [], []>} : vector<8x8xf32>, vector<8x8xf32>, vector<8x8xf32> -> vector<8x8xf32>
    %cst_51 = arith.constant dense<0xFF800000> : vector<8xf32>
    %100 = vector.multi_reduction <maximumf>, %99, %cst_51 [1] : vector<8x8xf32> to vector<8xf32>
    %101 = vector.shape_cast %100 : vector<8xf32> to vector<8x1xf32>
    %102 = vector.broadcast %101 : vector<8x1xf32> to vector<8x8xf32>
    %103 = arith.subf %99, %102 : vector<8x8xf32>
    %104 = math.exp %103 : vector<8x8xf32>
    %cst_52 = arith.constant dense<0.000000e+00> : vector<8xf32>
    %105 = vector.multi_reduction <add>, %104, %cst_52 [1] : vector<8x8xf32> to vector<8xf32>
    %106 = vector.shape_cast %105 : vector<8xf32> to vector<8x1xf32>
    %107 = tpu.reciprocal %106 {approx = true} : vector<8x1xf32> -> vector<8x1xf32>
    %108 = vector.broadcast %107 : vector<8x1xf32> to vector<8x8xf32>
    %109 = arith.mulf %104, %108 : vector<8x8xf32>
    %cst_53 = arith.constant dense<0.000000e+00> : vector<8x8xf32>
    %110 = tpu.matmul %109, %98, %cst_53 {dimension_numbers = #tpu.dot_dimension_numbers<[1], [0], [0], [1], [0, 0, 1, 1], [], []>} : vector<8x8xf32>, vector<8x8xf32>, vector<8x8xf32> -> vector<8x8xf32>
    %111 = arith.truncf %110 : vector<8x8xf32> to vector<8x8xbf16>
    %c0_54 = arith.constant 0 : index
    %c24 = arith.constant 24 : index
    %c0_55 = arith.constant 0 : index
    %112 = vector.load %arg11[%c0_54, %c24, %c0_55] : memref<1x32x32xbf16, #tpu.memory_space<vmem>>, vector<1x8x32xbf16>
    %113 = vector.shape_cast %112 : vector<1x8x32xbf16> to vector<8x32xbf16>
    %cst_56 = arith.constant dense<0.000000e+00> : vector<8x32xf32>
    %114 = tpu.matmul %111, %113, %cst_56 {dimension_numbers = #tpu.dot_dimension_numbers<[1], [0], [0], [1], [0, 0, 1, 1], [], []>} : vector<8x8xbf16>, vector<8x32xbf16>, vector<8x32xf32> -> vector<8x32xf32>
    %115 = arith.addf %93, %114 : vector<8x32xf32>
    %c0_57 = arith.constant 0 : index
    %c0_58 = arith.constant 0 : index
    %c0_59 = arith.constant 0 : index
    %116 = vector.load %arg12[%c0_57, %c0_58, %c0_59] : memref<1x1x32xf32, #tpu.memory_space<vmem>>, vector<1x1x32xf32>
    %117 = vector.shape_cast %116 : vector<1x1x32xf32> to vector<1x32xf32>
    %118 = vector.broadcast %117 : vector<1x32xf32> to vector<8x32xf32>
    %119 = arith.addf %115, %118 : vector<8x32xf32>
    %120 = arith.addf %4, %119 : vector<8x32xf32>
    %c0_60 = arith.constant 0 : index
    %c0_61 = arith.constant 0 : index
    %c0_62 = arith.constant 0 : index
    %121 = vector.load %arg13[%c0_60, %c0_61, %c0_62] : memref<1x1x32xf32, #tpu.memory_space<vmem>>, vector<1x1x32xf32>
    %122 = vector.shape_cast %121 : vector<1x1x32xf32> to vector<1x32xf32>
    %c0_63 = arith.constant 0 : index
    %c0_64 = arith.constant 0 : index
    %c0_65 = arith.constant 0 : index
    %123 = vector.load %arg14[%c0_63, %c0_64, %c0_65] : memref<1x1x32xf32, #tpu.memory_space<vmem>>, vector<1x1x32xf32>
    %124 = vector.shape_cast %123 : vector<1x1x32xf32> to vector<1x32xf32>
    %cst_66 = arith.constant dense<0.000000e+00> : vector<8xf32>
    %125 = vector.multi_reduction <add>, %120, %cst_66 [1] : vector<8x32xf32> to vector<8xf32>
    %126 = vector.shape_cast %125 : vector<8xf32> to vector<8x1xf32>
    %cst_67 = arith.constant 3.200000e+01 : f32
    %127 = vector.broadcast %cst_67 : f32 to vector<8x1xf32>
    %128 = arith.divf %126, %127 : vector<8x1xf32>
    %129 = vector.broadcast %128 : vector<8x1xf32> to vector<8x32xf32>
    %130 = arith.subf %120, %129 : vector<8x32xf32>
    %131 = arith.mulf %130, %130 : vector<8x32xf32>
    %cst_68 = arith.constant dense<0.000000e+00> : vector<8xf32>
    %132 = vector.multi_reduction <add>, %131, %cst_68 [1] : vector<8x32xf32> to vector<8xf32>
    %133 = vector.shape_cast %132 : vector<8xf32> to vector<8x1xf32>
    %cst_69 = arith.constant 3.200000e+01 : f32
    %134 = vector.broadcast %cst_69 : f32 to vector<8x1xf32>
    %135 = arith.divf %133, %134 : vector<8x1xf32>
    %136 = vector.broadcast %128 : vector<8x1xf32> to vector<8x32xf32>
    %137 = arith.subf %120, %136 : vector<8x32xf32>
    %cst_70 = arith.constant 9.99999974E-6 : f32
    %138 = vector.broadcast %cst_70 : f32 to vector<8x1xf32>
    %139 = arith.addf %135, %138 : vector<8x1xf32>
    %140 = math.rsqrt %139 : vector<8x1xf32>
    %141 = vector.broadcast %140 : vector<8x1xf32> to vector<8x32xf32>
    %142 = arith.mulf %137, %141 : vector<8x32xf32>
    %143 = vector.broadcast %122 : vector<1x32xf32> to vector<8x32xf32>
    %144 = arith.mulf %142, %143 : vector<8x32xf32>
    %145 = vector.broadcast %124 : vector<1x32xf32> to vector<8x32xf32>
    %146 = arith.addf %144, %145 : vector<8x32xf32>
    %147 = arith.truncf %146 : vector<8x32xf32> to vector<8x32xbf16>
    %c0_71 = arith.constant 0 : index
    %c0_72 = arith.constant 0 : index
    %c0_73 = arith.constant 0 : index
    %148 = vector.load %arg15[%c0_71, %c0_72, %c0_73] : memref<1x32x2048xbf16, #tpu.memory_space<vmem>>, vector<1x32x2048xbf16>
    %149 = vector.shape_cast %148 : vector<1x32x2048xbf16> to vector<32x2048xbf16>
    %cst_74 = arith.constant dense<0.000000e+00> : vector<8x2048xf32>
    %150 = tpu.matmul %147, %149, %cst_74 {dimension_numbers = #tpu.dot_dimension_numbers<[1], [0], [0], [1], [0, 0, 1, 1], [], []>} : vector<8x32xbf16>, vector<32x2048xbf16>, vector<8x2048xf32> -> vector<8x2048xf32>
    %c0_75 = arith.constant 0 : index
    %c0_76 = arith.constant 0 : index
    %c0_77 = arith.constant 0 : index
    %151 = vector.load %arg16[%c0_75, %c0_76, %c0_77] : memref<1x1x2048xf32, #tpu.memory_space<vmem>>, vector<1x1x2048xf32>
    %152 = vector.shape_cast %151 : vector<1x1x2048xf32> to vector<1x2048xf32>
    %153 = vector.broadcast %152 : vector<1x2048xf32> to vector<8x2048xf32>
    %154 = arith.addf %150, %153 : vector<8x2048xf32>
    %cst_78 = arith.constant 0.000000e+00 : f32
    %155 = vector.broadcast %cst_78 : f32 to vector<8x2048xf32>
    %156 = arith.maximumf %154, %155 : vector<8x2048xf32>
    %157 = arith.truncf %156 : vector<8x2048xf32> to vector<8x2048xbf16>
    %c0_79 = arith.constant 0 : index
    %c0_80 = arith.constant 0 : index
    %c0_81 = arith.constant 0 : index
    %158 = vector.load %arg17[%c0_79, %c0_80, %c0_81] : memref<1x2048x32xbf16, #tpu.memory_space<vmem>>, vector<1x2048x32xbf16>
    %159 = vector.shape_cast %158 : vector<1x2048x32xbf16> to vector<2048x32xbf16>
    %cst_82 = arith.constant dense<0.000000e+00> : vector<8x32xf32>
    %160 = tpu.matmul %157, %159, %cst_82 {dimension_numbers = #tpu.dot_dimension_numbers<[1], [0], [0], [1], [0, 0, 1, 1], [], []>} : vector<8x2048xbf16>, vector<2048x32xbf16>, vector<8x32xf32> -> vector<8x32xf32>
    %c0_83 = arith.constant 0 : index
    %c0_84 = arith.constant 0 : index
    %c0_85 = arith.constant 0 : index
    %161 = vector.load %arg18[%c0_83, %c0_84, %c0_85] : memref<1x1x32xf32, #tpu.memory_space<vmem>>, vector<1x1x32xf32>
    %162 = vector.shape_cast %161 : vector<1x1x32xf32> to vector<1x32xf32>
    %163 = vector.broadcast %162 : vector<1x32xf32> to vector<8x32xf32>
    %164 = arith.addf %160, %163 : vector<8x32xf32>
    %165 = arith.addf %146, %164 : vector<8x32xf32>
    %c0_86 = arith.constant 0 : index
    %c0_87 = arith.constant 0 : index
    %c0_88 = arith.constant 0 : index
    %166 = vector.load %arg19[%c0_86, %c0_87, %c0_88] : memref<1x1x32xf32, #tpu.memory_space<vmem>>, vector<1x1x32xf32>
    %167 = vector.shape_cast %166 : vector<1x1x32xf32> to vector<1x32xf32>
    %c0_89 = arith.constant 0 : index
    %c0_90 = arith.constant 0 : index
    %c0_91 = arith.constant 0 : index
    %168 = vector.load %arg20[%c0_89, %c0_90, %c0_91] : memref<1x1x32xf32, #tpu.memory_space<vmem>>, vector<1x1x32xf32>
    %169 = vector.shape_cast %168 : vector<1x1x32xf32> to vector<1x32xf32>
    %cst_92 = arith.constant dense<0.000000e+00> : vector<8xf32>
    %170 = vector.multi_reduction <add>, %165, %cst_92 [1] : vector<8x32xf32> to vector<8xf32>
    %171 = vector.shape_cast %170 : vector<8xf32> to vector<8x1xf32>
    %cst_93 = arith.constant 3.200000e+01 : f32
    %172 = vector.broadcast %cst_93 : f32 to vector<8x1xf32>
    %173 = arith.divf %171, %172 : vector<8x1xf32>
    %174 = vector.broadcast %173 : vector<8x1xf32> to vector<8x32xf32>
    %175 = arith.subf %165, %174 : vector<8x32xf32>
    %176 = arith.mulf %175, %175 : vector<8x32xf32>
    %cst_94 = arith.constant dense<0.000000e+00> : vector<8xf32>
    %177 = vector.multi_reduction <add>, %176, %cst_94 [1] : vector<8x32xf32> to vector<8xf32>
    %178 = vector.shape_cast %177 : vector<8xf32> to vector<8x1xf32>
    %cst_95 = arith.constant 3.200000e+01 : f32
    %179 = vector.broadcast %cst_95 : f32 to vector<8x1xf32>
    %180 = arith.divf %178, %179 : vector<8x1xf32>
    %181 = vector.broadcast %173 : vector<8x1xf32> to vector<8x32xf32>
    %182 = arith.subf %165, %181 : vector<8x32xf32>
    %cst_96 = arith.constant 9.99999974E-6 : f32
    %183 = vector.broadcast %cst_96 : f32 to vector<8x1xf32>
    %184 = arith.addf %180, %183 : vector<8x1xf32>
    %185 = math.rsqrt %184 : vector<8x1xf32>
    %186 = vector.broadcast %185 : vector<8x1xf32> to vector<8x32xf32>
    %187 = arith.mulf %182, %186 : vector<8x32xf32>
    %188 = vector.broadcast %167 : vector<1x32xf32> to vector<8x32xf32>
    %189 = arith.mulf %187, %188 : vector<8x32xf32>
    %190 = vector.broadcast %169 : vector<1x32xf32> to vector<8x32xf32>
    %191 = arith.addf %189, %190 : vector<8x32xf32>
    %c1_i32 = arith.constant 1 : i32
    %192 = arith.cmpi slt, %arg1, %c1_i32 : i32
    %193 = arith.extui %192 : i1 to i32
    %c0_i32_97 = arith.constant 0 : i32
    %194 = arith.cmpi ne, %193, %c0_i32_97 : i32
    scf.if %194 {
      %c0_100 = arith.constant 0 : index
      %c0_101 = arith.constant 0 : index
      %c0_102 = arith.constant 0 : index
      %198 = vector.load %arg23[%c0_100, %c0_101, %c0_102] : memref<1x8x32xf32, #tpu.memory_space<vmem>>, vector<1x8x32xf32>
      %199 = vector.shape_cast %198 : vector<1x8x32xf32> to vector<8x32xf32>
      %200 = vector.shape_cast %191 : vector<8x32xf32> to vector<1x8x32xf32>
      tpu.vector_store %arg23[%c0_100, %c0_101, %c0_102], %200 {strides = array<i32>} : memref<1x8x32xf32, #tpu.memory_space<vmem>>, vector<1x8x32xf32>,
    } else {
    }
    %c1_i32_98 = arith.constant 1 : i32
    %195 = arith.cmpi eq, %arg1, %c1_i32_98 : i32
    %196 = arith.extui %195 : i1 to i32
    %c0_i32_99 = arith.constant 0 : i32
    %197 = arith.cmpi ne, %196, %c0_i32_99 : i32
    scf.if %197 {
      %c0_100 = arith.constant 0 : index
      %c0_101 = arith.constant 0 : index
      %198 = vector.load %arg21[%c0_100, %c0_101] : memref<1x32xf32, #tpu.memory_space<vmem>>, vector<1x32xf32>
      %c0_102 = arith.constant 0 : index
      %c0_103 = arith.constant 0 : index
      %199 = vector.load %arg22[%c0_102, %c0_103] : memref<1x32xf32, #tpu.memory_space<vmem>>, vector<1x32xf32>
      %cst_104 = arith.constant dense<0.000000e+00> : vector<8xf32>
      %200 = vector.multi_reduction <add>, %191, %cst_104 [1] : vector<8x32xf32> to vector<8xf32>
      %201 = vector.shape_cast %200 : vector<8xf32> to vector<8x1xf32>
      %cst_105 = arith.constant 3.200000e+01 : f32
      %202 = vector.broadcast %cst_105 : f32 to vector<8x1xf32>
      %203 = arith.divf %201, %202 : vector<8x1xf32>
      %204 = vector.broadcast %203 : vector<8x1xf32> to vector<8x32xf32>
      %205 = arith.subf %191, %204 : vector<8x32xf32>
      %206 = arith.mulf %205, %205 : vector<8x32xf32>
      %cst_106 = arith.constant dense<0.000000e+00> : vector<8xf32>
      %207 = vector.multi_reduction <add>, %206, %cst_106 [1] : vector<8x32xf32> to vector<8xf32>
      %208 = vector.shape_cast %207 : vector<8xf32> to vector<8x1xf32>
      %cst_107 = arith.constant 3.200000e+01 : f32
      %209 = vector.broadcast %cst_107 : f32 to vector<8x1xf32>
      %210 = arith.divf %208, %209 : vector<8x1xf32>
      %211 = vector.broadcast %203 : vector<8x1xf32> to vector<8x32xf32>
      %212 = arith.subf %191, %211 : vector<8x32xf32>
      %cst_108 = arith.constant 9.99999974E-6 : f32
      %213 = vector.broadcast %cst_108 : f32 to vector<8x1xf32>
      %214 = arith.addf %210, %213 : vector<8x1xf32>
      %215 = math.rsqrt %214 : vector<8x1xf32>
      %216 = vector.broadcast %215 : vector<8x1xf32> to vector<8x32xf32>
      %217 = arith.mulf %212, %216 : vector<8x32xf32>
      %218 = vector.broadcast %198 : vector<1x32xf32> to vector<8x32xf32>
      %219 = arith.mulf %217, %218 : vector<8x32xf32>
      %220 = vector.broadcast %199 : vector<1x32xf32> to vector<8x32xf32>
      %221 = arith.addf %219, %220 : vector<8x32xf32>
      %c0_109 = arith.constant 0 : index
      %c0_110 = arith.constant 0 : index
      %c0_111 = arith.constant 0 : index
      %222 = vector.load %arg23[%c0_109, %c0_110, %c0_111] : memref<1x8x32xf32, #tpu.memory_space<vmem>>, vector<1x8x32xf32>
      %223 = vector.shape_cast %222 : vector<1x8x32xf32> to vector<8x32xf32>
      %224 = vector.shape_cast %221 : vector<8x32xf32> to vector<1x8x32xf32>
      tpu.vector_store %arg23[%c0_109, %c0_110, %c0_111], %224 {strides = array<i32>} : memref<1x8x32xf32, #tpu.memory_space<vmem>>, vector<1x8x32xf32>,
    } else {
    }
    return
  }
  func.func @transform_0(%arg0: i32, %arg1: i32) -> (i32, i32, i32) {
    %c0_i32 = arith.constant 0 : i32
    %c0_i32_0 = arith.constant 0 : i32
    %c0_i32_1 = arith.constant 0 : i32
    return %arg0, %c0_i32, %c0_i32_0 : i32, i32, i32
  }
  func.func @transform_1(%arg0: i32, %arg1: i32) -> (i32, i32) {
    %c0_i32 = arith.constant 0 : i32
    %c0_i32_0 = arith.constant 0 : i32
    %c0_i32_1 = arith.constant 0 : i32
    return %c0_i32, %c0_i32_0 : i32, i32
  }
  func.func @transform_2(%arg0: i32, %arg1: i32) -> (i32, i32) {
    %c0_i32 = arith.constant 0 : i32
    %c0_i32_0 = arith.constant 0 : i32
    %c0_i32_1 = arith.constant 0 : i32
    return %c0_i32, %c0_i32_0 : i32, i32
  }
  func.func @transform_3(%arg0: i32, %arg1: i32) -> (i32, i32, i32) {
    %c0_i32 = arith.constant 0 : i32
    %c0_i32_0 = arith.constant 0 : i32
    %c0_i32_1 = arith.constant 0 : i32
    return %arg1, %c0_i32, %c0_i32_0 : i32, i32, i32
  }
  func.func @transform_4(%arg0: i32, %arg1: i32) -> (i32, i32, i32) {
    %c0_i32 = arith.constant 0 : i32
    %c0_i32_0 = arith.constant 0 : i32
    %c0_i32_1 = arith.constant 0 : i32
    return %arg1, %c0_i32, %c0_i32_0 : i32, i32, i32
  }
  func.func @transform_5(%arg0: i32, %arg1: i32) -> (i32, i32, i32) {
    %c0_i32 = arith.constant 0 : i32
    %c0_i32_0 = arith.constant 0 : i32
    %c0_i32_1 = arith.constant 0 : i32
    return %arg1, %c0_i32, %c0_i32_0 : i32, i32, i32
  }
  func.func @transform_6(%arg0: i32, %arg1: i32) -> (i32, i32, i32) {
    %c0_i32 = arith.constant 0 : i32
    %c0_i32_0 = arith.constant 0 : i32
    %c0_i32_1 = arith.constant 0 : i32
    return %arg1, %c0_i32, %c0_i32_0 : i32, i32, i32
  }
  func.func @transform_7(%arg0: i32, %arg1: i32) -> (i32, i32, i32) {
    %c0_i32 = arith.constant 0 : i32
    %c0_i32_0 = arith.constant 0 : i32
    %c0_i32_1 = arith.constant 0 : i32
    return %arg1, %c0_i32, %c0_i32_0 : i32, i32, i32
  }
  func.func @transform_8(%arg0: i32, %arg1: i32) -> (i32, i32, i32) {
    %c0_i32 = arith.constant 0 : i32
    %c0_i32_0 = arith.constant 0 : i32
    %c0_i32_1 = arith.constant 0 : i32
    return %arg1, %c0_i32, %c0_i32_0 : i32, i32, i32
  }
  func.func @transform_9(%arg0: i32, %arg1: i32) -> (i32, i32, i32) {
    %c0_i32 = arith.constant 0 : i32
    %c0_i32_0 = arith.constant 0 : i32
    %c0_i32_1 = arith.constant 0 : i32
    return %arg1, %c0_i32, %c0_i32_0 : i32, i32, i32
  }
  func.func @transform_10(%arg0: i32, %arg1: i32) -> (i32, i32, i32) {
    %c0_i32 = arith.constant 0 : i32
    %c0_i32_0 = arith.constant 0 : i32
    %c0_i32_1 = arith.constant 0 : i32
    return %arg1, %c0_i32, %c0_i32_0 : i32, i32, i32
  }
  func.func @transform_11(%arg0: i32, %arg1: i32) -> (i32, i32, i32) {
    %c0_i32 = arith.constant 0 : i32
    %c0_i32_0 = arith.constant 0 : i32
    %c0_i32_1 = arith.constant 0 : i32
    return %arg1, %c0_i32, %c0_i32_0 : i32, i32, i32
  }
  func.func @transform_12(%arg0: i32, %arg1: i32) -> (i32, i32, i32) {
    %c0_i32 = arith.constant 0 : i32
    %c0_i32_0 = arith.constant 0 : i32
    %c0_i32_1 = arith.constant 0 : i32
    return %arg1, %c0_i32, %c0_i32_0 : i32, i32, i32
  }
  func.func @transform_13(%arg0: i32, %arg1: i32) -> (i32, i32, i32) {
    %c0_i32 = arith.constant 0 : i32
    %c0_i32_0 = arith.constant 0 : i32
    %c0_i32_1 = arith.constant 0 : i32
    return %arg1, %c0_i32, %c0_i32_0 : i32, i32, i32
  }
  func.func @transform_14(%arg0: i32, %arg1: i32) -> (i32, i32, i32) {
    %c0_i32 = arith.constant 0 : i32
    %c0_i32_0 = arith.constant 0 : i32
    %c0_i32_1 = arith.constant 0 : i32
    return %arg1, %c0_i32, %c0_i32_0 : i32, i32, i32
  }
  func.func @transform_15(%arg0: i32, %arg1: i32) -> (i32, i32, i32) {
    %c0_i32 = arith.constant 0 : i32
    %c0_i32_0 = arith.constant 0 : i32
    %c0_i32_1 = arith.constant 0 : i32
    return %arg1, %c0_i32, %c0_i32_0 : i32, i32, i32
  }
  func.func @transform_16(%arg0: i32, %arg1: i32) -> (i32, i32, i32) {
    %c0_i32 = arith.constant 0 : i32
    %c0_i32_0 = arith.constant 0 : i32
    %c0_i32_1 = arith.constant 0 : i32
    return %arg1, %c0_i32, %c0_i32_0 : i32, i32, i32
  }
  func.func @transform_17(%arg0: i32, %arg1: i32) -> (i32, i32, i32) {
    %c0_i32 = arith.constant 0 : i32
    %c0_i32_0 = arith.constant 0 : i32
    %c0_i32_1 = arith.constant 0 : i32
    return %arg1, %c0_i32, %c0_i32_0 : i32, i32, i32
  }
  func.func @transform_18(%arg0: i32, %arg1: i32) -> (i32, i32, i32) {
    %c0_i32 = arith.constant 0 : i32
    %c0_i32_0 = arith.constant 0 : i32
    %c0_i32_1 = arith.constant 0 : i32
    return %arg1, %c0_i32, %c0_i32_0 : i32, i32, i32
  }
  func.func @transform_19(%arg0: i32, %arg1: i32) -> (i32, i32) {
    %c0_i32 = arith.constant 0 : i32
    %c0_i32_0 = arith.constant 0 : i32
    %c0_i32_1 = arith.constant 0 : i32
    return %c0_i32, %c0_i32_0 : i32, i32
  }
  func.func @transform_20(%arg0: i32, %arg1: i32) -> (i32, i32) {
    %c0_i32 = arith.constant 0 : i32
    %c0_i32_0 = arith.constant 0 : i32
    %c0_i32_1 = arith.constant 0 : i32
    return %c0_i32, %c0_i32_0 : i32, i32
  }
  func.func @transform_21(%arg0: i32, %arg1: i32) -> (i32, i32, i32) {
    %c0_i32 = arith.constant 0 : i32
    %c0_i32_0 = arith.constant 0 : i32
    %c0_i32_1 = arith.constant 0 : i32
    return %arg0, %c0_i32, %c0_i32_0 : i32, i32, i32
  }
}

</mosaic_0001>

<bundles_post_ra>
// kernel: forward.1
= control target key start
LH: loop header
LB: loop body
LE: loop exit
PB: predicated region body
PF: predicated region fallthrough
CT: control target
= control target key end

     0   :  { %s6108_s0 = inlined_call_operand.vmem [shape: f32[2,8,64], index: 0, kind: input, shape index: {}]   ;;  %s6109_s1 = inlined_call_operand.vmem [shape: bf16[64,32], index: 1, kind: input, shape index: {}]   ;;  %s6110_s2 = inlined_call_operand.vmem [shape: f32[1,32], index: 2, kind: input, shape index: {}]   ;;  %s6111_s3 = inlined_call_operand.vmem [shape: bf16[2,32,32], index: 3, kind: input, shape index: {}]   ;;  %s6112_s4 = inlined_call_operand.vmem [shape: f32[2,1,32], index: 4, kind: input, shape index: {}]   ;;  %s6113_s5 = inlined_call_operand.vmem [shape: bf16[2,32,32], index: 5, kind: input, shape index: {}]   ;;  %s6114_s6 = inlined_call_operand.vmem [shape: f32[2,1,32], index: 6, kind: input, shape index: {}]   ;;  %s6115_s7 = inlined_call_operand.vmem [shape: bf16[2,32,32], index: 7, kind: input, shape index: {}]   ;;  %s6116_s8 = inlined_call_operand.vmem [shape: f32[2,1,32], index: 8, kind: input, shape index: {}]   ;;  %s6117_s9 = inlined_call_operand.vmem [shape: bf16[2,32,32], index: 9, kind: input, shape index: {}]   ;;  %s6118_s10 = inlined_call_operand.vmem [shape: f32[2,1,32], index: 10, kind: input, shape index: {}]   ;;  %s6119_s11 = inlined_call_operand.vmem [shape: f32[2,1,32], index: 11, kind: input, shape index: {}]   ;;  %s6120_s12 = inlined_call_operand.vmem [shape: f32[2,1,32], index: 12, kind: input, shape index: {}]   ;;  %s6121_s13 = inlined_call_operand.vmem [shape: bf16[2,32,2048], index: 13, kind: input, shape index: {}]   ;;  %s6122_s14 = inlined_call_operand.vmem [shape: f32[2,1,2048], index: 14, kind: input, shape index: {}]   ;;  %s6123_s15 = inlined_call_operand.vmem [shape: bf16[2,2048,32], index: 15, kind: input, shape index: {}]   ;;  %s6124_s16 = inlined_call_operand.vmem [shape: f32[2,1,32], index: 16, kind: input, shape index: {}]   ;;  %s6125_s17 = inlined_call_operand.vmem [shape: f32[2,1,32], index: 17, kind: input, shape index: {}]   ;;  %s6126_s18 = inlined_call_operand.vmem [shape: f32[2,1,32], index: 18, kind: input, shape index: {}]   ;;  %s6127_s19 = inlined_call_operand.vmem [shape: f32[1,32], index: 19, kind: input, shape index: {}]   ;;  %s6128_s20 = inlined_call_operand.vmem [shape: f32[1,32], index: 20, kind: input, shape index: {}]   ;;  %s6129_s21 = inlined_call_operand.hbm [shape: f32[2,8,32], index: 21, kind: output, shape index: {}]  }
   0x1   :  { %6147 = sst [smem:[#allocation20_spill]] %s6108_s0 }
   0x2   :  { %6148 = sst [smem:[#allocation21_spill]] %s6109_s1 }
   0x3   :  { %6149 = sst [smem:[#allocation22_spill]] %s6110_s2 }
   0x4   :  { %6150 = sst [smem:[#allocation23_spill]] %s6111_s3 }
   0x5   :  { %6151 = sst [smem:[#allocation24_spill]] %s6112_s4 }
   0x6   :  { %6152 = sst [smem:[#allocation25_spill]] %s6113_s5 }
   0x7   :  { %6153 = sst [smem:[#allocation26_spill]] %s6114_s6 }
   0x8   :  { %6154 = sst [smem:[#allocation27_spill]] %s6115_s7 }
   0x9   :  { %6155 = sst [smem:[#allocation28_spill]] %s6117_s9 }
   0xa   :  { %6156 = sst [smem:[#allocation29_spill]] %s6121_s13 }
   0xb   :  { %6157 = sst [smem:[#allocation30_spill]] %s6122_s14 }
   0xc   :  { %6158 = sst [smem:[#allocation31_spill]] %s6123_s15 }
   0xd   :  { %6159 = sst [smem:[#allocation32_spill]] %s6126_s18 }
   0xe   :  { %6160 = sst [smem:[#allocation33_spill]] %s6127_s19 }
   0xf   :  { %6161 = sst [smem:[#allocation34_spill]] %s6128_s20 }
  0x10   :  { %6162 = sst [smem:[#allocation35_spill]] %s6129_s21 }
  0x11   :  { %26 = vsyncpa [#allocation3], 0 }
  0x12   :  { %28 = vsyncpa [#allocation3 + $0x1], 0  ;;  %s5424_s2 = smov 0   ;;  %s5426_s25 = smov 0  }
  0x13   :  { %s5428_s26 = smov 0   ;;  %s5430_s27 = smov 0  }
  0x14   :  { %s5432_s3 = smov 0   ;;  %s5434_s28 = smov 0  }
  0x15   :  { %s5436_s29 = smov 0   ;;  %s5438_s0 = smov 0  }
  0x16 LB: > { %6163 = sst [smem:[#allocation5_spill]] %s5275_s2  ;;  %s4415_s4 = sadd.s32 4294967295, %s5303_s0   ;;  %s5303_s0 = sphi %s5438_s0, %s34_s0   ;;  %s5299_s29 = sphi %s5436_s29, %s6224_s29   ;;  %s5295_s28 = sphi %s5434_s28, %s6223_s28   ;;  %s5291_s3 = sphi %s5432_s3, %s6222_s3   ;;  %s5287_s27 = sphi %s5430_s27, %s6221_s27   ;;  %s5283_s26 = sphi %s5428_s26, %s6220_s26   ;;  %s5279_s25 = sphi %s5426_s25, %s6219_s25   ;;  %s5275_s2 = sphi %s5424_s2, %s6218_s2  }
  0x17   : > { %6164 = sst [smem:[#allocation6_spill]] %s5279_s25  ;;  %s4416_s30 = sadd.s32 4294967294, %s5303_s0  }
  0x18   : > { %6165 = sst [smem:[#allocation7_spill]] %s5283_s26  ;;  %s43_s5 = sadd.s32 1, %s5295_s28 }
  0x19   : > { %6166 = sst [smem:[#allocation8_spill]] %s5287_s27  ;;  %p44_p0 = scmp.ge.s32.totalorder %s43_s5, 2 }
  0x1a   : > { %6167 = sst [smem:[#allocation9_spill]] %s5291_s3  ;;  %s46_s22 = sadd.s32 1, %s5299_s29 }
  0x1b   : > { %6168 = sst [smem:[#allocation10_spill]] %s5295_s28  ;;  %p589_p1 = scmp.ne.s32.totalorder %s5283_s26, %s5279_s25 }
  0x1c   : > { %6169 = sst [smem:[#allocation11_spill]] %s5299_s29  ;;  %p590_p2 = scmp.eq.s32.totalorder %s4415_s4, 3 }
  0x1d   : > { %6170 = sst [smem:[#allocation12_spill]] %s5303_s0  ;;  %s6226_s5 = smov (%p44_p0, %s43_s5), 0 }
  0x1e   : > { %6171 = sst [smem:[#allocation13_spill]] %s6226_s5  ;;  %s6228_s22 = smov (!%p44_p0, %s46_s22), %s5299_s29 }
  0x1f   : > { %p5473_p3 = por %p590_p2, %p589_p1  ;;  %p595_p4 = scmp.ne.s32.totalorder %s5279_s25, %s5275_s2 }
  0x20   : > { %p48_p5 = scmp.ge.s32.totalorder %s6228_s22, 2  ;;  %p596_p6 = scmp.eq.s32.totalorder %s4416_s30, 3 }
  0x21   : > { %s6172_s23 = scalar_select %p5473_p3, 1, 0 }
  0x22   : > { %p4419_p7 = scmp.ge.s32.totalorder %s5303_s0, 1  ;;  %p742_p8 = scmp.lt.s32.totalorder %s5303_s0, 5 }
  0x23   : > { %6173 = sst [smem:[#allocation14_spill]] %s6172_s23  ;;  %s6230_s22 = smov (%p48_p5, %s6228_s22), 0 }
  0x24   : > { %6174 = sst [smem:[#allocation15_spill]] %s6230_s22  ;;  %p5483_p9 = por %p596_p6, %p595_p4 }
  0x25   : > { %p743_p10 = pnand %p4419_p7, %p742_p8  ;;  %s576_s24 = ssub.s32 %s5299_s29, %s6230_s22 }
  0x26   : > { %s6175_s1 = scalar_select %p5483_p9, 1, 0 }
  0x27   : > { %s579_s4 = sadd.s32 1, %s5283_s26  ;;  %p577_p11 = scmp.eq.s32.totalorder %s576_s24, 0 }
  0x28   : > { %6176 = sst [smem:[#allocation16_spill]] %s6175_s1  ;;  %746 = sbr.rel (%p743_p10) target bundleno = 4200 (0x1068), region = 104 }
  0x29   : > { %s5491_s5 = scalar_select %p577_p11, %s5283_s26, %s579_s4  }
  0x2b   : > { %6177 = sst [smem:[#allocation17_spill]] %s5491_s5 }
  0x2d   : > { %s6136_s30 = sand.u32 1, %s5279_s25   ;;  %p862_p12 = scmp.lt.s32.totalorder %s5291_s3, 1 }
  0x2e   : > { %s4420_s28 = sshll.u32 %s6136_s30, 3  ;;  %p866_p13 = scmp.lt.s32.totalorder %s5287_s27, 1 }
  0x2f   : > { %s863_s2 = scalar_select %p862_p12, %s5291_s3, 1 }
  0x30   : > { %s5500_s1 = scalar_select %p866_p13, %s5287_s27, 1 }
  0x31   : > { %s4421_s24 = sshll.u32 %s863_s2, 3  ;;  %s6178_s29 = sld [smem:[#allocation20_spill]] }
  0x32   : > { %s4652_s30 = sshll.u32 %s5500_s1, 4  ;;  %s6180_s21 = sld [smem:[#allocation23_spill]] }
  0x33   : > { %s6183_s18 = sld [smem:[#allocation25_spill]]  ;;  %s4656_s6 = sshll.u32 %s5500_s1, 8 }
  0x34   : > { %s6185_s7 = sld [smem:[#allocation27_spill]]  ;;  %s920_s26 = scalar_lea.vmem %s6124_s16, %s5500_s1 }
  0x35   : > { %s6186_s9 = sld [smem:[#allocation28_spill]] }
  0x36   : > { %s6187_s14 = sld [smem:[#allocation30_spill]] }
  0x37   : > { %s5505_s5 = scalar_lea.vmem %s6178_s29, %s4421_s24  ;;  %s6188_s13 = sld [smem:[#allocation29_spill]] }
  0x38   : > { %6179 = sst [smem:[#allocation18_spill]] %s5505_s5  ;;  %s5511_s23 = scalar_lea.vmem %s6180_s21, %s4652_s30 }
  0x39   : > { %6181 = sst [smem:[#allocation19_spill]] %s5511_s23  ;;  %s5520_s22 = scalar_lea.vmem %s6183_s18, %s4652_s30 }
  0x3a   : > { %s5529_s21 = scalar_lea.vmem %s6185_s7, %s4652_s30  ;;  %s4657_s18 = sshll.u32 %s5500_s1, 10 }
  0x3b   : > { %s5538_s27 = scalar_lea.vmem %s6186_s9, %s4652_s30  ;;  %s6189_s15 = sld [smem:[#allocation31_spill]] }
  0x3c   : > { %s5556_s25 = scalar_lea.vmem %s6187_s14, %s4652_s30  ;;  %s923_s30 = scalar_lea.vmem %s6125_s17, %s5500_s1 }
  0x3d   : > { %s5561_s9 = scalar_lea.vmem %s6188_s13, %s4656_s6  ;;  %s6190_s14 = sld [smem:[#allocation32_spill]] }
  0x3e   : > { %s5581_s6 = scalar_lea.vmem [#allocation2], %s4420_s28  ;;  %s6191_s3 = sld [smem:[#allocation8_spill]] }
  0x41   : > { %s5567_s29 = scalar_lea.vmem %s6189_s15, %s4657_s18 }
  0x43   : > { %s926_s20 = scalar_lea.vmem %s6190_s14, %s5500_s1 }
  0x44   : > { %p4435_p0 = scmp.ne.s32.totalorder %s6191_s3, 0 }
  0x45   : > { %s6192_s2 = sld [smem:[#allocation21_spill]] (!%p4435_p0) }
  0x46   : > { %931 = sbr.rel (%p4435_p0) target bundleno = 291 (0x123), region = 108  ;;  %s6194_s15 = sld [smem:[#allocation18_spill]] (!%p4435_p0) }
  0x47   : > { %s6195_s3 = sld [smem:[#allocation22_spill]] (!%p4435_p0) }
  0x4b   : > { %s6193_s13 = smov %s6192_s2  ;;  %v5051_v0 = vld [vmem:[%s6192_s2 + $0x18] sm:$0xff]   ;;  %v5305_v1 = vmov 0.0   ;;  %vm5306_vm0 = vmmov 0   ;;  %vm973_vm1 = vcmask 523264   ;;  %vm1017_vm2 = vcmask 261120  }
  0x4c   : > { %4872 = vmatprep.subr.bf16.mxu0 %v5305_v1  ;;  %v5052_v2 = vld [vmem:[%s6193_s13 + $0x10] sm:$0xff]   ;;  %4880 = vmatprep.mubr.msk.bf16.mxu0 %vm5306_vm0, %v5305_v1  ;;  %v5053_v3 = vld [vmem:[%s6193_s13 + $0x8] sm:$0xff]   ;;  %v5054_v4 = vld [vmem:[%s6193_s13] sm:$0xff]  }
  0x4d   : > { %4873 = vmatpush3.bf16.msra.mxu0 %v5051_v0  ;;  %v932_v5 = vld [vmem:[%s6194_s15] sm:$0xff] }
  0x4e   : > { %4874 = vmatprep.subr.bf16.mxu0 %v5305_v1  ;;  %v933_v6 = vpack.c.bf16 %v932_v5, %v932_v5  ;;  %v4436_v7 = vld [vmem:[%s6195_s3] ss:$0 sm:$0xff] }
  0x51   : > { %4875 = vmatpush3.bf16.msra.mxu0 %v5052_v2 }
  0x52   : > { %4876 = vmatprep.subr.bf16.mxu0 %v5305_v1 }
  0x55   : > { %4877 = vmatpush3.bf16.msra.mxu0 %v5053_v3 }
  0x56   : > { %4878 = vmatprep.subr.bf16.mxu0 %v5305_v1 }
  0x59   : > { %4879 = vmatpush3.bf16.msra.mxu0 %v5054_v4 }
  0x5c   : > { %4881 = vmatmul.mubr.msk.bf16.vlgmr.msra.gmra.mxu0 %vm973_vm1, %v933_v6 }
 0x11c   : > { %v1011_v8 = vpop.f32.mrf.mxu0 }
 0x11d   : > { %v1012_v9 = vadd.f32 %v4436_v7, %v1011_v8 }
 0x11e   : > { %v4882_v10 = vpop.f32.mrf.mxu0 }
 0x11f   : > { %1018 = vst.msk [vmem:[%s5581_s6] sm:$0xff] %vm1017_vm2, %v1012_v9 }
 0x120   : > { %v1014_v11 = vpop.f32.mrf.mxu0 }
 0x122   : > { %v4883_v12 = vpop.f32.mrf.mxu0 }
 0x123 PF: > { %s6196_s19 = sld [smem:[#allocation19_spill]]  ;;  %v5307_v14 = vmov 0.0   ;;  %v5056_v15 = vld [vmem:[%s5520_s22 + $0x8] sm:$0xff]   ;;  %vm5308_vm3 = vmmov 0   ;;  %v5058_v17 = vld [vmem:[%s5520_s22] sm:$0xff]   ;;  %vm1044_vm4 = vcmask 261120   ;;  %s6201_s23 = scalar_lea.vmem %s6116_s8, %s5500_s1 }
 0x124   : > { %4884 = vmatprep.subr.bf16.mxu0 %v5307_v14  ;;  %4892 = vmatprep.subr.bf16.mxu1 %v5307_v14  ;;  %v5059_v20 = vld [vmem:[%s5529_s21 + $0x8] sm:$0xff]   ;;  %v5060_v21 = vld [vmem:[%s5529_s21] sm:$0xff]   ;;  %s6197_s18 = sld [smem:[#allocation24_spill]]  ;;  %vm1215_vm5 = vcmask 64512   ;;  %s5309_s28 = smov 120   ;;  %vm1549_vm6 = vcmask 1043456  }
 0x125   : > { %4888 = vmatprep.mubr.msk.bf16.mxu0 %vm5308_vm3, %v5307_v14  ;;  %4893 = vmatpush3.bf16.msra.mxu1 %v5056_v15  ;;  %s6199_s14 = sld [smem:[#allocation26_spill]]  ;;  %v4450_v35 = vld [vmem:[%s6201_s23] ss:$0 sm:$0xff]  ;;  %s5310_s0 = smov 112   ;;  %v1545_v62 = vld [vmem:[%s5538_s27 + $0x4] sm:$0xf] }
 0x126   : > { %4894 = vmatprep.subr.bf16.mxu1 %v5307_v14  ;;  %4896 = vmatprep.mubr.msk.bf16.mxu1 %vm5308_vm3, %v5307_v14  ;;  %v5614_v18 = vld [vmem:[%s5581_s6] sm:$0xff]  ;;  %v1551_v63 = vsel %vm1549_vm6, %v1545_v62, 0  ;;  %s5311_s3 = smov 104   ;;  %s6202_s15 = scalar_lea.vmem %s6118_s10, %s5500_s1 }
 0x127   : > { %v1020_v19 = vpack.c.bf16 %v5614_v18, %v5614_v18  ;;  %v1377_v2 = vld [vmem:[%s5538_s27] sm:$0xf]  ;;  %s6206_s5 = sld [smem:[#allocation8_spill]] }
 0x128   : > { %v1597_v5 = vsel %vm1549_vm6, %v1377_v2, 0  ;;  %v4470_v2 = vld [vmem:[%s6202_s15] ss:$0 sm:$0xff] }
 0x129   : > { %v5055_v13 = vld [vmem:[%s6196_s19 + $0x8] sm:$0xff]   ;;  %v5057_v16 = vld [vmem:[%s6196_s19] sm:$0xff]   ;;  %4895 = vmatpush3.bf16.msra.mxu1 %v5058_v17 }
 0x12a   : > { %4885 = vmatpush3.bf16.msra.mxu0 %v5055_v13  ;;  %4908 = vmatprep.subr.mxu1 %v5307_v14  ;;  %s6198_s2 = scalar_lea.vmem %s6197_s18, %s5500_s1 }
 0x12b   : > { %4886 = vmatprep.subr.bf16.mxu0 %v5307_v14  ;;  %v4442_v22 = vld [vmem:[%s6198_s2] ss:$0 sm:$0xff]  ;;  %s6200_s21 = scalar_lea.vmem %s6199_s14, %s5500_s1  ;;  %s6203_s2 = scalar_lea.vmem %s6119_s11, %s5500_s1 }
 0x12c   : > { %4897 = vmatmul.mubr.msk.bf16.vlgmr.msra.gmra.mxu1 %vm1044_vm4, %v1020_v19  ;;  %v4446_v23 = vld [vmem:[%s6200_s21] ss:$0 sm:$0xff]  ;;  %s6204_s14 = scalar_lea.vmem %s6120_s12, %s5500_s1 }
 0x12d   : > { %4910 = vmatprep.mubr.msk.f32.mxu1 %vm5308_vm3, %v5307_v14  ;;  %p4644_p1 = scmp.ge.s32.totalorder %s6206_s5, 1 }
 0x12e   : > { %4887 = vmatpush3.bf16.msra.mxu0 %v5057_v16 }
 0x12f   : > { %4900 = vmatprep.subr.bf16.mxu0 %v5307_v14 }
 0x131   : > { %4889 = vmatmul.mubr.msk.bf16.vlgmr.msra.gmra.mxu0 %vm1044_vm4, %v1020_v19 }
 0x132   : > { %4904 = vmatprep.mubr.msk.bf16.mxu0 %vm5308_vm3, %v5307_v14  ;;  %4901 = vmatpush3.bf16.msra.mxu0 %v5059_v20 }
 0x133   : > { %4902 = vmatprep.subr.bf16.mxu0 %v5307_v14 }
 0x136   : > { %4903 = vmatpush3.bf16.msra.mxu0 %v5060_v21 }
 0x137   : > { %4918 = vmatprep.subr.mxu0 %v5307_v14 }
 0x139   : > { %4905 = vmatmul.mubr.msk.bf16.vlgmr.msra.gmra.mxu0 %vm1044_vm4, %v1020_v19 }
 0x13a   : > { %4920 = vmatprep.mubr.msk.f32.mxu0 %vm5308_vm3, %v5307_v14 }
 0x1ec   : > { %v1145_v26 = vpop.f32.mrf.mxu1 }
 0x1ed   : > { %v5643_v27 = vadd.f32 %v4446_v23, %v1145_v26 }
 0x1ee   : > { %v4898_v30 = vpop.f32.mrf.mxu1 }
 0x1ef   : > { %1380 = vrot.lane.b32.xlu0 %v5643_v27, %s5309_s28  ;;  %4909 = vmatpush3.xpose.msk.msra.mxu1 %vm1215_vm5, %v5643_v27 }
 0x1f0   : > { %v1148_v32 = vpop.f32.mrf.mxu1  ;;  %4913 = vmatprep.subr.mxu1 %v5307_v14 }
 0x1f1   : > { %v1082_v24 = vpop.f32.mrf.mxu0 }
 0x1f2   : > { %v1083_v25 = vadd.f32 %v4442_v22, %v1082_v24  ;;  %v4899_v34 = vpop.f32.mrf.mxu1 }
 0x1f3   : > { %v4890_v28 = vpop.f32.mrf.mxu0 }
 0x1f4   : > { %v5645_v29 = vmul.f32 0.35355338, %v1083_v25 }
 0x1f5   : > { %v1085_v31 = vpop.f32.mrf.mxu0 }
 0x1f6   : > { %4911 = vmatmul.mubr.msk.f32.vlgmr.msra.gmra.mxu1 %vm1215_vm5, %v5645_v29  ;;  %1378 = vrot.lane.b32.xlu0 %v5645_v29, %s5309_s28 }
 0x1f7   : > { %v4891_v33 = vpop.f32.mrf.mxu0  ;;  %4915 = vmatprep.mubr.msk.f32.mxu1 %vm5308_vm3, %v5307_v14 }
 0x1f9   : > { %v1208_v36 = vpop.f32.mrf.mxu0 }
 0x1fa   : > { %v5663_v37 = vadd.f32 %v4450_v35, %v1208_v36 }
 0x1fb   : > { %v4906_v38 = vpop.f32.mrf.mxu0 }
 0x1fc   : > { %4914 = vmatpush3.msra.mxu1 %v5663_v37 }
 0x1fd   : > { %v1211_v39 = vpop.f32.mrf.mxu0  ;;  %4923 = vmatprep.subr.mxu1 %v5307_v14 }
 0x1ff   : > { %v4907_v40 = vpop.f32.mrf.mxu0 }
 0x261   : > { %v1381_v41 = vpop.permute.xlu0 %1380 }
 0x262   : > { %4919 = vmatpush3.xpose.msk.msra.mxu0 %vm1215_vm5, %v1381_v41 }
 0x263   : > { %4928 = vmatprep.subr.bf16.mxu0 %v5307_v14 }
 0x268   : > { %v1379_v42 = vpop.permute.xlu0 %1378 }
 0x269   : > { %4921 = vmatmul.mubr.msk.f32.vlgmr.msra.gmra.mxu0 %vm1215_vm5, %v1379_v42 }
 0x26a   : > { %4930 = vmatprep.mubr.msk.bf16.mxu0 %vm5308_vm3, %v5307_v14  ;;  %4929 = vmatpush3.bf16.msra.mxu0 %v1551_v63 }
 0x26b   : > { %4940 = vmatprep.subr.mxu0 %v5307_v14 }
 0x2b6   : > { %v1288_v43 = vpop.f32.mrf.mxu1 }
 0x2b7   : > { %v1292_v44 = vsel %vm1215_vm5, %v1288_v43, -inf }
 0x2b8   : > { %1293 = vmax.xlane.f32.xlu1 %v1292_v44  ;;  %v4912_v45 = vpop.f32.mrf.mxu1 }
 0x329   : > { %v1452_v46 = vpop.f32.mrf.mxu0 }
 0x32a   : > { %v1456_v47 = vsel %vm1215_vm5, %v1452_v46, -inf }
 0x32b   : > { %1457 = vmax.xlane.f32.xlu1 %v1456_v47  ;;  %v4922_v48 = vpop.f32.mrf.mxu0 }
 0x341   : > { %v1294_v49 = vpop.xlane.xlu1 %1293 }
 0x342   : > { %v1295_v50 = vsub.f32 %v1288_v43, %v1294_v49 }
 0x344   : > { %v1296_v51 = vmul.f32 1.442695, %v1295_v50 }
 0x346   : > { %5189 = vpow2.f32 %v1296_v51 }
 0x353   : > { %v5190_v52 = vpop.eup %5189 }
 0x354   : > { %v1298_v53 = vsel %vm1215_vm5, %v5190_v52, 0.0 }
 0x355   : > { %1299 = vadd.xlane.f32.xlu0 %v1298_v53 }
 0x36b   : > { %1728 = vrot.lane.b32.xlu0 %v5663_v37, %s5310_s0 }
 0x3b4   : > { %v1458_v54 = vpop.xlane.xlu1 %1457 }
 0x3b5   : > { %v1459_v55 = vsub.f32 %v1452_v46, %v1458_v54 }
 0x3b7   : > { %v1460_v56 = vmul.f32 1.442695, %v1459_v55 }
 0x3b9   : > { %5191 = vpow2.f32 %v1460_v56 }
 0x3c6   : > { %v5192_v57 = vpop.eup %5191 }
 0x3c7   : > { %v1462_v58 = vsel %vm1215_vm5, %v5192_v57, 0.0 }
 0x3c8   : > { %1463 = vadd.xlane.f32.xlu1 %v1462_v58 }
 0x3d9   : > { %1468 = vrot.lane.b32.xlu1 %v5663_v37, %s5309_s28 }
 0x3dd   : > { %1641 = vrot.lane.b32.xlu1 %v5643_v27, %s5310_s0 }
 0x3de   : > { %v1300_v59 = vpop.xlane.xlu0 %1299 }
 0x3df   : > { %5193 = vrcp.f32 %v1300_v59 }
 0x3e1   : > { %1639 = vrot.lane.b32.xlu1 %v5645_v29, %s5310_s0 }
 0x3e2   : > { %v1729_v9 = vpop.permute.xlu0 %1728 }
 0x3ec   : > { %v5194_v60 = vpop.eup %5193 }
 0x3ed   : > { %v1302_v61 = vmul.f32 %v5194_v60, %v5190_v52  ;;  %v2019_v52 = vld [vmem:[%s5538_s27 + $0xc] sm:$0xf] }
 0x3ee   : > { %v2024_v53 = vsel %vm1549_vm6, %v2019_v52, 0  ;;  %v2110_v52 = vld [vmem:[%s5561_s9 + $0x18] sm:$0xff] }
 0x3ef   : > { %4916 = vmatmul.mubr.msk.f32.vlgmr.msra.gmra.mxu1 %vm1215_vm5, %v1302_v61 }
 0x3f0   : > { %4925 = vmatprep.mubr.msk.f32.mxu1 %vm5308_vm3, %v5307_v14 }
 0x451   : > { %v1464_v0 = vpop.xlane.xlu1 %1463 }
 0x452   : > { %5195 = vrcp.f32 %v1464_v0 }
 0x455   : > { %v1469_v1 = vpop.permute.xlu1 %1468 }
 0x456   : > { %4924 = vmatpush3.msra.mxu1 %v1469_v1 }
 0x457   : > { %4934 = vmatprep.subr.bf16.mxu1 %v5307_v14 }
 0x459   : > { %v1642_v13 = vpop.permute.xlu1 %1641 }
 0x45d   : > { %v1640_v15 = vpop.permute.xlu1 %1639 }
 0x45f   : > { %v5196_v3 = vpop.eup %5195 }
 0x460   : > { %v1466_v4 = vmul.f32 %v5196_v3, %v5192_v57 }
 0x462   : > { %4926 = vmatmul.mubr.msk.f32.vlgmr.msra.gmra.mxu1 %vm1215_vm5, %v1466_v4 }
 0x463   : > { %4935 = vmatpush3.bf16.msra.mxu1 %v1597_v5  ;;  %4936 = vmatprep.mubr.msk.bf16.mxu1 %vm5308_vm3, %v5307_v14 }
 0x464   : > { %4945 = vmatprep.subr.mxu1 %v5307_v14 }
 0x4af   : > { %v1372_v6 = vpop.f32.mrf.mxu1 }
 0x4b0   : > { %v1376_v7 = vpack.c.bf16 %v1372_v6, %v1372_v6 }
 0x4b1   : > { %v4917_v8 = vpop.f32.mrf.mxu1 }
 0x4b2   : > { %4937 = vmatmul.mubr.msk.bf16.vlgmr.msra.gmra.mxu1 %vm1215_vm5, %v1376_v7 }
 0x4b3   : > { %4946 = vmatpush3.msra.mxu1 %v1729_v9  ;;  %4947 = vmatprep.mubr.msk.f32.mxu1 %vm5308_vm3, %v5307_v14 }
 0x4b4   : > { %4956 = vmatprep.subr.mxu1 %v5307_v14 }
 0x522   : > { %v1540_v10 = vpop.f32.mrf.mxu1 }
 0x523   : > { %v1544_v11 = vpack.c.bf16 %v1540_v10, %v1540_v10 }
 0x524   : > { %v4927_v12 = vpop.f32.mrf.mxu1 }
 0x525   : > { %4931 = vmatmul.mubr.msk.bf16.vlgmr.msra.gmra.mxu0 %vm1215_vm5, %v1544_v11 }
 0x526   : > { %4941 = vmatpush3.xpose.msk.msra.mxu0 %vm1215_vm5, %v1642_v13  ;;  %4942 = vmatprep.mubr.msk.f32.mxu0 %vm5308_vm3, %v5307_v14 }
 0x527   : > { %4950 = vmatprep.subr.bf16.mxu0 %v5307_v14 }
 0x52d   : > { %4943 = vmatmul.mubr.msk.f32.vlgmr.msra.gmra.mxu0 %vm1215_vm5, %v1640_v15 }
 0x52e   : > { %4952 = vmatprep.mubr.msk.bf16.mxu0 %vm5308_vm3, %v5307_v14 }
 0x572   : > { %v1633_v16 = vpop.f32.mrf.mxu1 }
 0x574   : > { %v4938_v17 = vpop.f32.mrf.mxu1 }
 0x575   : > { %v2131_v17 = vld [vmem:[%s5561_s9 + $0xc0] sm:$0xff] }
 0x576   : > { %v1636_v19 = vpop.f32.mrf.mxu1 }
 0x577   : > { %v2124_v19 = vld [vmem:[%s5561_s9 + $0x88] sm:$0xff] }
 0x578   : > { %v4939_v20 = vpop.f32.mrf.mxu1 }
 0x5e5   : > { %v1587_v21 = vpop.f32.mrf.mxu0 }
 0x5e7   : > { %v4932_v22 = vpop.f32.mrf.mxu0 }
 0x5e9   : > { %v1590_v23 = vpop.f32.mrf.mxu0 }
 0x5eb   : > { %v4933_v24 = vpop.f32.mrf.mxu0 }
 0x5ec   : > { %v2107_v24 = vld [vmem:[%s5561_s9] sm:$0xff] }
 0x5ed   : > { %v1713_v25 = vpop.f32.mrf.mxu0 }
 0x5ee   : > { %v1717_v26 = vsel %vm1215_vm5, %v1713_v25, -inf }
 0x5ef   : > { %1718 = vmax.xlane.f32.xlu1 %v1717_v26  ;;  %v4944_v28 = vpop.f32.mrf.mxu0  ;;  %v2108_v26 = vld [vmem:[%s5561_s9 + $0x8] sm:$0xff] }
 0x678   : > { %v1719_v30 = vpop.xlane.xlu1 %1718 }
 0x679   : > { %v1720_v31 = vsub.f32 %v1713_v25, %v1719_v30  ;;  %v2115_v25 = vld [vmem:[%s5561_s9 + $0x40] sm:$0xff]  ;;  %v2116_v30 = vld [vmem:[%s5561_s9 + $0x48] sm:$0xff] }
 0x67a   : > { %v4474_v28 = vcombine.high %v2107_v24, %v2115_v25 }
 0x67b   : > { %v1721_v32 = vmul.f32 1.442695, %v1720_v31  ;;  %v4473_v31 = vcombine.low %v2107_v24, %v2115_v25 }
 0x67d   : > { %5197 = vpow2.f32 %v1721_v32  ;;  %v4475_v32 = vcombine.low %v2108_v26, %v2116_v30 }
 0x68a   : > { %v5198_v33 = vpop.eup %5197 }
 0x68b   : > { %v1723_v34 = vsel %vm1215_vm5, %v5198_v33, 0.0 }
 0x68c   : > { %1724 = vadd.xlane.f32.xlu0 %v1723_v34  ;;  %v2125_v34 = vld [vmem:[%s5561_s9 + $0x90] sm:$0xff] }
 0x6a2   : > { %1855 = vrot.lane.b32.xlu0 %v5643_v27, %s5311_s3  ;;  %v1805_v27 = vld [vmem:[%s5538_s27 + $0x8] sm:$0xf] }
 0x6a6   : > { %1853 = vrot.lane.b32.xlu0 %v5645_v29, %s5311_s3  ;;  %v1810_v29 = vsel %vm1549_vm6, %v1805_v27, 0 }
 0x6a7   : > { %4951 = vmatpush3.bf16.msra.mxu0 %v1810_v29 }
 0x6a8   : > { %4966 = vmatprep.subr.bf16.mxu0 %v5307_v14 }
 0x715   : > { %v1725_v35 = vpop.xlane.xlu0 %1724 }
 0x716   : > { %5199 = vrcp.f32 %v1725_v35  ;;  %v2133_v35 = vld [vmem:[%s5561_s9 + $0xd0] sm:$0xff] }
 0x717   : > { %v4493_v27 = vcombine.low %v2125_v34, %v2133_v35 }
 0x719   : > { %v1856_v38 = vpop.permute.xlu0 %1855 }
 0x71d   : > { %v1854_v40 = vpop.permute.xlu0 %1853 }
 0x723   : > { %v5200_v36 = vpop.eup %5199 }
 0x724   : > { %v1727_v39 = vmul.f32 %v5200_v36, %v5198_v33  ;;  %v4476_v33 = vcombine.high %v2108_v26, %v2116_v30  ;;  %v2126_v36 = vld [vmem:[%s5561_s9 + $0x98] sm:$0xff] }
 0x725   : > { %v5062_v30 = vld [vmem:[%s5567_s29 + $0xf8] sm:$0xff]  }
 0x726   : > { %4948 = vmatmul.mubr.msk.f32.vlgmr.msra.gmra.mxu1 %vm1215_vm5, %v1727_v39  ;;  %v4494_v39 = vcombine.high %v2125_v34, %v2133_v35  ;;  %v5066_v34 = vld [vmem:[%s5567_s29 + $0xf0] sm:$0xff]  }
 0x727   : > { %4957 = vmatpush3.xpose.msk.msra.mxu1 %vm1215_vm5, %v1856_v38  ;;  %4958 = vmatprep.mubr.msk.f32.mxu1 %vm5308_vm3, %v5307_v14  ;;  %v5312_v38 = vmov 0   ;;  %v5067_v35 = vld [vmem:[%s5567_s29 + $0x30] sm:$0xff]  }
 0x728   : > { %4961 = vmatprep.subr.mxu1 %v5307_v14 }
 0x72a   : > { %4959 = vmatmul.mubr.msk.f32.vlgmr.msra.gmra.mxu1 %vm1215_vm5, %v1854_v40  ;;  %v2134_v40 = vld [vmem:[%s5561_s9 + $0xd8] sm:$0xff] }
 0x72b   : > { %4963 = vmatprep.mubr.msk.f32.mxu1 %vm5308_vm3, %v5307_v14  ;;  %v4495_v29 = vcombine.low %v2126_v36, %v2134_v40 }
 0x7e6   : > { %v1800_v41 = vpop.f32.mrf.mxu1 }
 0x7e7   : > { %v1804_v42 = vpack.c.bf16 %v1800_v41, %v1800_v41  ;;  %v4496_v41 = vcombine.high %v2126_v36, %v2134_v40  ;;  %v5068_v36 = vld [vmem:[%s5567_s29 + $0xb0] sm:$0xff]   ;;  %v5071_v40 = vld [vmem:[%s5567_s29 + $0x28] sm:$0xff]  }
 0x7e8   : > { %v4949_v43 = vpop.f32.mrf.mxu1 }
 0x7e9   : > { %4953 = vmatmul.mubr.msk.bf16.vlgmr.msra.gmra.mxu0 %vm1215_vm5, %v1804_v42 }
 0x7ea   : > { %v1927_v44 = vpop.f32.mrf.mxu1  ;;  %4968 = vmatprep.mubr.msk.bf16.mxu0 %vm5308_vm3, %v5307_v14  ;;  %4967 = vmatpush3.bf16.msra.mxu0 %v2024_v53  ;;  %v1634_v14 = vadd.f32 %v1633_v16, %v1587_v21  ;;  %v2123_v16 = vld [vmem:[%s5561_s9 + $0x80] sm:$0xff]  ;;  %v2118_v53 = vld [vmem:[%s5561_s9 + $0x58] sm:$0xff] }
 0x7eb   : > { %v1931_v45 = vsel %vm1215_vm5, %v1927_v44, -inf  ;;  %v4490_v20 = vcombine.high %v2123_v16, %v2131_v17  ;;  %v4489_v21 = vcombine.low %v2123_v16, %v2131_v17  ;;  %v2113_v17 = vld [vmem:[%s5561_s9 + $0x30] sm:$0xff] }
 0x7ec   : > { %1932 = vmax.xlane.f32.xlu0 %v1931_v45  ;;  %v4960_v46 = vpop.f32.mrf.mxu1 }
 0x7ed   : > { %v4471_v46 = vld [vmem:[%s6203_s2] ss:$0 sm:$0xff] }
 0x875   : > { %v1933_v47 = vpop.xlane.xlu0 %1932 }
 0x876   : > { %v1934_v48 = vsub.f32 %v1927_v44, %v1933_v47 }
 0x878   : > { %v1935_v49 = vmul.f32 1.442695, %v1934_v48  ;;  %v4472_v48 = vld [vmem:[%s6204_s14] ss:$0 sm:$0xff] }
 0x87a   : > { %5201 = vpow2.f32 %v1935_v49 }
 0x887   : > { %v5202_v50 = vpop.eup %5201 }
 0x888   : > { %v1937_v51 = vsel %vm1215_vm5, %v5202_v50, 0.0 }
 0x889   : > { %1938 = vadd.xlane.f32.xlu1 %v1937_v51  ;;  %v2117_v51 = vld [vmem:[%s5561_s9 + $0x50] sm:$0xff] }
 0x89a   : > { %1942 = vrot.lane.b32.xlu1 %v5663_v37, %s5311_s3 }
 0x8a9   : > { %v1846_v54 = vpop.f32.mrf.mxu0 }
 0x8aa   : > { %v1852_v55 = vadd.f32 %v1846_v54, %v1634_v14 }
 0x8ab   : > { %v4954_v56 = vpop.f32.mrf.mxu0 }
 0x8ac   : > { %v4480_v56 = vcombine.high %v2110_v52, %v2118_v53 }
 0x8ad   : > { %v1849_v57 = vpop.f32.mrf.mxu0 }
 0x8ae   : > { %v2127_v57 = vld [vmem:[%s5561_s9 + $0xa0] sm:$0xff] }
 0x8af   : > { %v4955_v58 = vpop.f32.mrf.mxu0 }
 0x8b0   : > { %v2135_v58 = vld [vmem:[%s5561_s9 + $0xe0] sm:$0xff] }
 0x912   : > { %v1939_v59 = vpop.xlane.xlu1 %1938 }
 0x913   : > { %5203 = vrcp.f32 %v1939_v59  ;;  %v2128_v59 = vld [vmem:[%s5561_s9 + $0xa8] sm:$0xff] }
 0x916   : > { %v1943_v60 = vpop.permute.xlu1 %1942 }
 0x917   : > { %4962 = vmatpush3.msra.mxu1 %v1943_v60  ;;  %v2136_v60 = vld [vmem:[%s5561_s9 + $0xe8] sm:$0xff] }
 0x918   : > { %2398 = vmatprep.subr.bf16.mxu1 %v4490_v20  ;;  %v2114_v20 = vld [vmem:[%s5561_s9 + $0x38] sm:$0xff] }
 0x920   : > { %v5204_v61 = vpop.eup %5203 }
 0x921   : > { %v1941_v62 = vmul.f32 %v5204_v61, %v5202_v50  ;;  %v2109_v50 = vld [vmem:[%s5561_s9 + $0x10] sm:$0xff] }
 0x922   : > { %v4477_v61 = vcombine.low %v2109_v50, %v2117_v51 }
 0x923   : > { %4964 = vmatmul.mubr.msk.f32.vlgmr.msra.gmra.mxu1 %vm1215_vm5, %v1941_v62  ;;  %v4479_v62 = vcombine.low %v2110_v52, %v2118_v53  ;;  %v5085_v52 = vld [vmem:[%s5567_s29 + $0x48] sm:$0xff]  }
 0x924   : > { %2399 = vmatpush1.bf16.msra.mxu1 %v4489_v21  ;;  %2418 = vmatprep.mubr.bf16.mxu1 %v5312_v38  ;;  %v5086_v53 = vld [vmem:[%s5567_s29 + $0xc8] sm:$0xff]  }
 0x925   : > { %2400 = vmatprep.subr.bf16.mxu1 %v4474_v28  ;;  %v5061_v28 = vld [vmem:[%s5567_s29 + $0x78] sm:$0xff]  }
 0x928   : > { %2401 = vmatpush1.bf16.msra.mxu1 %v4473_v31  ;;  %v5063_v31 = vld [vmem:[%s5567_s29 + $0x38] sm:$0xff]  }
 0x929   : > { %2480 = vmatprep.subr.bf16.mxu1 %v4494_v39  ;;  %v5070_v39 = vld [vmem:[%s5567_s29 + $0xe8] sm:$0xff]  }
 0x9e3   : > { %v2014_v37 = vpop.f32.mrf.mxu1 }
 0x9e4   : > { %v2018_v63 = vpack.c.bf16 %v2014_v37, %v2014_v37  ;;  %v4498_v37 = vcombine.high %v2127_v57, %v2135_v58 }
 0x9e5   : > { %v4965_v0 = vpop.f32.mrf.mxu1 }
 0x9e6   : > { %4969 = vmatmul.mubr.msk.bf16.vlgmr.msra.gmra.mxu0 %vm1215_vm5, %v2018_v63  ;;  %v4500_v63 = vcombine.high %v2128_v59, %v2136_v60  ;;  %v2111_v0 = vld [vmem:[%s5561_s9 + $0x20] sm:$0xff] }
 0x9e7   : > { %2459 = vmatprep.mubr.bf16.mxu0 %v5312_v38 }
 0xaa6   : > { %v2060_v1 = vpop.f32.mrf.mxu0 }
 0xaa7   : > { %v2066_v3 = vadd.f32 %v2060_v1, %v1852_v55  ;;  %v4478_v55 = vcombine.high %v2109_v50, %v2117_v51  ;;  %v2119_v1 = vld [vmem:[%s5561_s9 + $0x60] sm:$0xff]  ;;  %v5083_v50 = vld [vmem:[%s5567_s29 + $0x10] sm:$0xff]  }
 0xaa8   : > { %v4970_v4 = vpop.f32.mrf.mxu0  ;;  %v5084_v51 = vld [vmem:[%s5567_s29 + $0x90] sm:$0xff]  }
 0xaa9   : > { %v2074_v5 = vadd.f32 %v4470_v2, %v2066_v3  ;;  %v2112_v2 = vld [vmem:[%s5561_s9 + $0x28] sm:$0xff]  ;;  %v4497_v4 = vcombine.low %v2127_v57, %v2135_v58  ;;  %v5090_v57 = vld [vmem:[%s5567_s29 + $0xc0] sm:$0xff]  }
 0xaaa   : > { %v2063_v6 = vpop.f32.mrf.mxu0  ;;  %v2120_v3 = vld [vmem:[%s5561_s9 + $0x68] sm:$0xff]  ;;  %v5091_v58 = vld [vmem:[%s5567_s29] sm:$0xff]  }
 0xaab   : > { %v2075_v7 = vadd.f32 %v2074_v5, %v5614_v18  ;;  %v2132_v18 = vld [vmem:[%s5561_s9 + $0xc8] sm:$0xff]  ;;  %v4499_v5 = vcombine.low %v2128_v59, %v2136_v60  ;;  %v4482_v6 = vcombine.high %v2111_v0, %v2119_v1  ;;  %v5092_v59 = vld [vmem:[%s5567_s29 + $0x80] sm:$0xff]   ;;  %v5093_v60 = vld [vmem:[%s5567_s29 + $0x178] sm:$0xff]  }
 0xaac   : > { %v4971_v8 = vpop.f32.mrf.mxu0  ;;  %v4491_v22 = vcombine.low %v2124_v19, %v2132_v18  ;;  %v4492_v23 = vcombine.high %v2124_v19, %v2132_v18  ;;  %v2121_v19 = vld [vmem:[%s5561_s9 + $0x70] sm:$0xff]  ;;  %v2122_v18 = vld [vmem:[%s5561_s9 + $0x78] sm:$0xff] }
 0xaad   : > { %v2078_v9 = vsel %vm1044_vm4, %v2075_v7, 0.0  ;;  %v2129_v8 = vld [vmem:[%s5561_s9 + $0xb0] sm:$0xff]  ;;  %v4488_v24 = vcombine.high %v2114_v20, %v2122_v18  ;;  %v4485_v25 = vcombine.low %v2113_v17, %v2121_v19  ;;  %v4487_v26 = vcombine.low %v2114_v20, %v2122_v18 }
 0xaae   : > { %2079 = vadd.xlane.f32.xlu1 %v2078_v9  ;;  %2439 = vmatprep.subr.bf16.mxu0 %v4492_v23  ;;  %v2137_v9 = vld [vmem:[%s5561_s9 + $0xf0] sm:$0xff]  ;;  %v4486_v23 = vcombine.high %v2113_v17, %v2121_v19 }
 0xaaf   : > { %2440 = vmatpush1.bf16.msra.mxu0 %v4491_v22  ;;  %v4501_v21 = vcombine.low %v2129_v8, %v2137_v9 }
 0xab0   : > { %2441 = vmatprep.subr.bf16.mxu0 %v4476_v33  ;;  %v5065_v33 = vld [vmem:[%s5567_s29 + $0x70] sm:$0xff]  }
 0xab3   : > { %2442 = vmatpush1.bf16.msra.mxu0 %v4475_v32  ;;  %v5064_v32 = vld [vmem:[%s5567_s29 + $0xb8] sm:$0xff]  }
 0xab4   : > { %2521 = vmatprep.subr.bf16.mxu0 %v4496_v41  ;;  %v5074_v41 = vld [vmem:[%s5567_s29 + $0xe0] sm:$0xff]  }
 0xb37   : > { %v2080_v10 = vpop.xlane.xlu1 %2079 }
 0xb38   : > { %v2082_v11 = vmul.f32 0.03125, %v2080_v10  ;;  %v2130_v10 = vld [vmem:[%s5561_s9 + $0xb8] sm:$0xff] }
 0xb3a   : > { %v2083_v12 = vsub.f32 %v2075_v7, %v2082_v11  ;;  %v4484_v7 = vcombine.high %v2112_v2, %v2120_v3  ;;  %v2138_v11 = vld [vmem:[%s5561_s9 + $0xf8] sm:$0xff] }
 0xb3b   : > { %v4504_v16 = vcombine.high %v2130_v10, %v2138_v11  ;;  %v4503_v22 = vcombine.low %v2130_v10, %v2138_v11 }
 0xb3c   : > { %v2084_v13 = vmul.f32 %v2083_v12, %v2083_v12 }
 0xb3e   : > { %v2085_v15 = vsel %vm1044_vm4, %v2084_v13, 0.0  ;;  %v4483_v13 = vcombine.low %v2112_v2, %v2120_v3 }
 0xb3f   : > { %2086 = vadd.xlane.f32.xlu0 %v2085_v15  ;;  %v4502_v15 = vcombine.high %v2129_v8, %v2137_v9 }
 0xbc8   : > { %v2087_v42 = vpop.xlane.xlu0 %2086 }
 0xbc9   : > { %v2088_v43 = vmul.f32 0.03125, %v2087_v42  ;;  %v5075_v42 = vld [vmem:[%s5567_s29 + $0x20] sm:$0xff]  }
 0xbcb   : > { %v2089_v44 = vadd.f32 1e-05, %v2088_v43  ;;  %v5076_v43 = vld [vmem:[%s5567_s29 + $0xa0] sm:$0xff]  }
 0xbcd   : > { %5205 = vrsqrt.f32 %v2089_v44  ;;  %v5077_v44 = vld [vmem:[%s5567_s29 + $0x58] sm:$0xff]  }
 0xbda   : > { %v5206_v45 = vpop.eup %5205 }
 0xbdb   : > { %v2091_v47 = vmul.f32 %v5206_v45, %v2083_v12  ;;  %v4481_v12 = vcombine.low %v2111_v0, %v2119_v1  ;;  %v5078_v45 = vld [vmem:[%s5567_s29 + $0xd8] sm:$0xff]   ;;  %v5852_v0 = vld [vmem:[%s5556_s25 + $0x8] sm:$0xff] }
 0xbdd   : > { %v2098_v49 = vmul.f32 %v4471_v46, %v2091_v47  ;;  %v5079_v46 = vld [vmem:[%s5567_s29 + $0x18] sm:$0xff]  }
 0xbde   : > { %v5080_v47 = vld [vmem:[%s5567_s29 + $0x98] sm:$0xff]  }
 0xbdf   : > { %v5770_v14 = vadd.f32 %v4472_v48, %v2098_v49  ;;  %v5081_v48 = vld [vmem:[%s5567_s29 + $0x50] sm:$0xff]  }
 0xbe0   : > { %v5082_v49 = vld [vmem:[%s5567_s29 + $0xd0] sm:$0xff]  }
 0xbe1   : > { %v5774_v54 = vpack.c.bf16 %v5770_v14, %v5770_v14 }
 0xbe3   : > { %4505 = vmatmul.mubr.msk.bf16.vlgmr.msra.gmra.mxu1 %vm1044_vm4, %v5774_v54  ;;  %4506 = vmatmul.mubr.msk.bf16.vlgmr.msra.gmra.mxu0 %vm1044_vm4, %v5774_v54 }
 0xbe4   : > { %2481 = vmatpush1.bf16.msra.mxu1 %v4493_v27  ;;  %2522 = vmatpush1.bf16.msra.mxu0 %v4495_v29  ;;  %v5072_v27 = vld [vmem:[%s5567_s29 + $0xa8] sm:$0xff]   ;;  %v5073_v29 = vld [vmem:[%s5567_s29 + $0x60] sm:$0xff]  }
 0xbe5   : > { %2482 = vmatprep.subr.bf16.mxu1 %v4478_v55  ;;  %2523 = vmatprep.subr.bf16.mxu0 %v4480_v56  ;;  %v5088_v55 = vld [vmem:[%s5567_s29 + $0x88] sm:$0xff]   ;;  %v5089_v56 = vld [vmem:[%s5567_s29 + $0x40] sm:$0xff]  }
 0xbe6   : > { %2500 = vmatprep.mubr.bf16.mxu1 %v5312_v38  ;;  %2541 = vmatprep.mubr.bf16.mxu0 %v5312_v38 }
 0xbe8   : > { %2483 = vmatpush1.bf16.msra.mxu1 %v4477_v61  ;;  %2524 = vmatpush1.bf16.msra.mxu0 %v4479_v62  ;;  %v5094_v61 = vld [vmem:[%s5567_s29 + $0x1f8] sm:$0xff]   ;;  %v2143_v62 = vlaneseq }
 0xbe9   : > { %2562 = vmatprep.subr.bf16.mxu1 %v4498_v37  ;;  %2603 = vmatprep.subr.bf16.mxu0 %v4500_v63 }
 0xbea   : > { %v5848_v37 = vshrl.u32 %v2143_v62, 7 }
 0xbeb   : > { %4507 = vmatmul.mubr.msk.bf16.vlgmr.msra.gmra.mxu1 %vm1044_vm4, %v5774_v54  ;;  %4508 = vmatmul.mubr.msk.bf16.vlgmr.msra.gmra.mxu0 %vm1044_vm4, %v5774_v54 }
 0xbec   : > { %2563 = vmatpush1.bf16.msra.mxu1 %v4497_v4  ;;  %2604 = vmatpush1.bf16.msra.mxu0 %v4499_v5  ;;  %v2169_v63 = vsub.s32 6, %v5848_v37  ;;  %v2145_v2 = vsub.s32 0, %v5848_v37  ;;  %v2153_v3 = vsub.s32 2, %v5848_v37  ;;  %v5862_v4 = vld [vmem:[%s5556_s25] sm:$0xff]  ;;  %v2149_v5 = vsub.s32 1, %v5848_v37 }
 0xbed   : > { %2564 = vmatprep.subr.bf16.mxu1 %v4482_v6  ;;  %2605 = vmatprep.subr.bf16.mxu0 %v4484_v7  ;;  %v2157_v6 = vsub.s32 3, %v5848_v37  ;;  %v2165_v18 = vsub.s32 5, %v5848_v37 }
 0xbee   : > { %2582 = vmatprep.mubr.bf16.mxu1 %v5312_v38  ;;  %2623 = vmatprep.mubr.bf16.mxu0 %v5312_v38  ;;  %v5857_v1 = vrot.slane %v5852_v0, %v2169_v63  ;;  %v2146_v7 = vrot.slane %v5862_v4, %v2145_v2  ;;  %v2154_v8 = vrot.slane %v5862_v4, %v2153_v3 }
 0xbef   : > { %v2150_v9 = vrot.slane %v5862_v4, %v2149_v5  ;;  %v2158_v10 = vrot.slane %v5862_v4, %v2157_v6 }
 0xbf0   : > { %2565 = vmatpush1.bf16.msra.mxu1 %v4481_v12  ;;  %2606 = vmatpush1.bf16.msra.mxu0 %v4483_v13 }
 0xbf1   : > { %2644 = vmatprep.subr.bf16.mxu1 %v4502_v15  ;;  %2685 = vmatprep.subr.bf16.mxu0 %v4504_v16 }
 0xbf3   : > { %4509 = vmatmul.mubr.msk.bf16.vlgmr.msra.gmra.mxu1 %vm1044_vm4, %v5774_v54  ;;  %4510 = vmatmul.mubr.msk.bf16.vlgmr.msra.gmra.mxu0 %vm1044_vm4, %v5774_v54 }
 0xbf4   : > { %2645 = vmatpush1.bf16.msra.mxu1 %v4501_v21  ;;  %2686 = vmatpush1.bf16.msra.mxu0 %v4503_v22  ;;  %v2173_v21 = vsub.s32 7, %v5848_v37 }
 0xbf5   : > { %2646 = vmatprep.subr.bf16.mxu1 %v4486_v23  ;;  %2687 = vmatprep.subr.bf16.mxu0 %v4488_v24 }
 0xbf6   : > { %2664 = vmatprep.mubr.bf16.mxu1 %v5312_v38  ;;  %2705 = vmatprep.mubr.bf16.mxu0 %v5312_v38  ;;  %v5069_v38 = vld [vmem:[%s5567_s29 + $0x68] sm:$0xff]  }
 0xbf8   : > { %2647 = vmatpush1.bf16.msra.mxu1 %v4485_v25  ;;  %2688 = vmatpush1.bf16.msra.mxu0 %v4487_v26 }
 0xbf9   : > { %4696 = vmatprep.subr.bf16.mxu1 %v5061_v28  ;;  %4718 = vmatprep.subr.bf16.mxu0 %v5062_v30 }
 0xbfb   : > { %4511 = vmatmul.mubr.msk.bf16.vlgmr.msra.gmra.mxu1 %vm1044_vm4, %v5774_v54  ;;  %4512 = vmatmul.mubr.msk.bf16.vlgmr.msra.gmra.mxu0 %vm1044_vm4, %v5774_v54  ;;  %v5087_v54 = vld [vmem:[%s5567_s29 + $0x8] sm:$0xff]  }
 0xbfc   : > { %4697 = vmatpush3.bf16.msra.mxu1 %v5063_v31  ;;  %4719 = vmatpush3.bf16.msra.mxu0 %v5064_v32 }
 0xbfd   : > { %4698 = vmatprep.subr.bf16.mxu1 %v5065_v33  ;;  %4720 = vmatprep.subr.bf16.mxu0 %v5066_v34  ;;  %v2166_v34 = vrot.slane %v5862_v4, %v2165_v18 }
 0xc00   : > { %4699 = vmatpush3.bf16.msra.mxu1 %v5067_v35  ;;  %4721 = vmatpush3.bf16.msra.mxu0 %v5068_v36  ;;  %v2174_v35 = vrot.slane %v5862_v4, %v2173_v21  ;;  %v5095_v36 = vld [vmem:[%s5567_s29 + $0x138] sm:$0xff]  }
 0xc01   : > { %4700 = vmatprep.subr.bf16.mxu1 %v5069_v38  ;;  %4722 = vmatprep.subr.bf16.mxu0 %v5070_v39  ;;  %v5096_v38 = vld [vmem:[%s5567_s29 + $0x1b8] sm:$0xff]  }
 0xc04   : > { %4701 = vmatpush3.bf16.msra.mxu1 %v5071_v40  ;;  %4723 = vmatpush3.bf16.msra.mxu0 %v5072_v27 }
 0xc05   : > { %4702 = vmatprep.subr.bf16.mxu1 %v5073_v29  ;;  %4724 = vmatprep.subr.bf16.mxu0 %v5074_v41  ;;  %v5097_v41 = vld [vmem:[%s5567_s29 + $0x170] sm:$0xff]  }
 0xc08   : > { %4703 = vmatpush3.bf16.msra.mxu1 %v5075_v42  ;;  %4725 = vmatpush3.bf16.msra.mxu0 %v5076_v43  ;;  %v5098_v42 = vld [vmem:[%s5567_s29 + $0x1f0] sm:$0xff]  }
 0xc09   : > { %4704 = vmatprep.subr.bf16.mxu1 %v5077_v44  ;;  %4726 = vmatprep.subr.bf16.mxu0 %v5078_v45 }
 0xc0c   : > { %4705 = vmatpush3.bf16.msra.mxu1 %v5079_v46  ;;  %4727 = vmatpush3.bf16.msra.mxu0 %v5080_v47  ;;  %v5099_v47 = vld [vmem:[%s5567_s29 + $0x130] sm:$0xff]  }
 0xc0d   : > { %4706 = vmatprep.subr.bf16.mxu1 %v5081_v48  ;;  %4728 = vmatprep.subr.bf16.mxu0 %v5082_v49  ;;  %v5100_v48 = vld [vmem:[%s5567_s29 + $0x1b0] sm:$0xff]  }
 0xc10   : > { %4707 = vmatpush3.bf16.msra.mxu1 %v5083_v50  ;;  %4729 = vmatpush3.bf16.msra.mxu0 %v5084_v51  ;;  %v5101_v51 = vld [vmem:[%s5567_s29 + $0x168] sm:$0xff]  }
 0xc11   : > { %4708 = vmatprep.subr.bf16.mxu1 %v5085_v52  ;;  %4730 = vmatprep.subr.bf16.mxu0 %v5086_v53  ;;  %v5102_v52 = vld [vmem:[%s5567_s29 + $0x1e8] sm:$0xff]  }
 0xc14   : > { %4709 = vmatpush3.bf16.msra.mxu1 %v5087_v54  ;;  %4731 = vmatpush3.bf16.msra.mxu0 %v5088_v55 }
 0xc15   : > { %4710 = vmatprep.subr.bf16.mxu1 %v5089_v56  ;;  %4732 = vmatprep.subr.bf16.mxu0 %v5090_v57 }
 0xc18   : > { %4711 = vmatpush3.bf16.msra.mxu1 %v5091_v58  ;;  %4733 = vmatpush3.bf16.msra.mxu0 %v5092_v59  ;;  %v5103_v59 = vld [vmem:[%s5567_s29 + $0x128] sm:$0xff]  }
 0xc19   : > { %4740 = vmatprep.subr.bf16.mxu1 %v5093_v60  ;;  %4762 = vmatprep.subr.bf16.mxu0 %v5094_v61  ;;  %v5104_v60 = vld [vmem:[%s5567_s29 + $0x1a8] sm:$0xff]  }
 0xca3   : > { %v2420_v11 = vpop.f32.mrf.mxu1  ;;  %v2461_v12 = vpop.f32.mrf.mxu0 }
 0xca4   : > { %v2421_v13 = vadd.f32 %v2420_v11, %v2146_v7  ;;  %v2462_v15 = vadd.f32 %v2461_v12, %v2154_v8  ;;  %v5105_v7 = vld [vmem:[%s5567_s29 + $0x160] sm:$0xff]   ;;  %v2161_v11 = vsub.s32 4, %v5848_v37 }
 0xca5   : > { %v2422_v16 = vpop.f32.mrf.mxu1  ;;  %v2463_v17 = vpop.f32.mrf.mxu0  ;;  %v5106_v8 = vld [vmem:[%s5567_s29 + $0x1e0] sm:$0xff]  }
 0xca6   : > { %v2423_v19 = vadd.f32 %v2422_v16, %v2150_v9  ;;  %v2464_v20 = vadd.f32 %v2463_v17, %v2158_v10  ;;  %v2714_v22 = vmax.f32 %v2421_v13, 0.0  ;;  %v2716_v23 = vmax.f32 %v2462_v15, 0.0  ;;  %v5107_v12 = vld [vmem:[%s5567_s29 + $0x120] sm:$0xff]   ;;  %v5109_v17 = vld [vmem:[%s5567_s29 + $0x158] sm:$0xff]  }
 0xca7   : > { %v2424_v24 = vpop.f32.mrf.mxu1  ;;  %v2465_v25 = vpop.f32.mrf.mxu0  ;;  %v5108_v13 = vld [vmem:[%s5567_s29 + $0x1a0] sm:$0xff]  }
 0xca8   : > { %v2715_v26 = vmax.f32 %v2423_v19, 0.0  ;;  %v2717_v28 = vmax.f32 %v2464_v20, 0.0  ;;  %v2730_v39 = vpack.c.bf16 %v2714_v22, %v2714_v22  ;;  %v2732_v40 = vpack.c.bf16 %v2716_v23, %v2716_v23  ;;  %v5110_v19 = vld [vmem:[%s5567_s29 + $0x1d8] sm:$0xff]  }
 0xca9   : > { %v2425_v30 = vpop.f32.mrf.mxu1  ;;  %v2466_v31 = vpop.f32.mrf.mxu0  ;;  %v2194_v20 = vrot.slane %v5852_v0, %v2161_v11  ;;  %v5111_v24 = vld [vmem:[%s5567_s29 + $0x118] sm:$0xff]  }
 0xcaa   : > { %v2731_v32 = vpack.c.bf16 %v2715_v26, %v2715_v26  ;;  %v2733_v33 = vpack.c.bf16 %v2717_v28, %v2717_v28  ;;  %v5112_v25 = vld [vmem:[%s5567_s29 + $0x198] sm:$0xff]   ;;  %v5113_v30 = vld [vmem:[%s5567_s29 + $0x150] sm:$0xff]  }
 0xcab   : > { %v5888_v27 = vpop.f32.mrf.mxu1  ;;  %v5890_v29 = vpop.f32.mrf.mxu0  ;;  %v5114_v31 = vld [vmem:[%s5567_s29 + $0x1d0] sm:$0xff]  }
 0xcac   : > { %3809 = vmatprep.mubr.bf16.mxu1 %v2731_v32  ;;  %3849 = vmatprep.mubr.bf16.mxu0 %v2733_v33 }
 0xcad   : > { %v2504_v43 = vpop.f32.mrf.mxu1  ;;  %v2545_v44 = vpop.f32.mrf.mxu0  ;;  %3810 = vmatmul.mubr.bf16.vlgmr.msra.gmra.mxu1 %v2730_v39  ;;  %3850 = vmatmul.mubr.bf16.vlgmr.msra.gmra.mxu0 %v2732_v40  ;;  %v2162_v39 = vrot.slane %v5862_v4, %v2161_v11  ;;  %v2170_v40 = vrot.slane %v5862_v4, %v2169_v63  ;;  %v5119_v63 = vld [vmem:[%s5567_s29 + $0x108] sm:$0xff]  }
 0xcae   : > { %v2505_v45 = vadd.f32 %v2504_v43, %v2166_v34  ;;  %v2546_v46 = vadd.f32 %v2545_v44, %v2174_v35  ;;  %4741 = vmatpush3.bf16.msra.mxu1 %v5095_v36  ;;  %4763 = vmatpush3.bf16.msra.mxu0 %v5096_v38  ;;  %v5115_v36 = vld [vmem:[%s5567_s29 + $0x110] sm:$0xff]   ;;  %v5118_v43 = vld [vmem:[%s5567_s29 + $0x1c8] sm:$0xff]   ;;  %v2182_v44 = vrot.slane %v5852_v0, %v2149_v5  ;;  %v5121_v5 = vld [vmem:[%s5567_s29 + $0x140] sm:$0xff]  }
 0xcaf   : > { %v2506_v49 = vpop.f32.mrf.mxu1  ;;  %v2547_v50 = vpop.f32.mrf.mxu0  ;;  %4742 = vmatprep.subr.bf16.mxu1 %v5097_v41  ;;  %4764 = vmatprep.subr.bf16.mxu0 %v5098_v42  ;;  %v5116_v38 = vld [vmem:[%s5567_s29 + $0x190] sm:$0xff]   ;;  %v5120_v4 = vld [vmem:[%s5567_s29 + $0x188] sm:$0xff]  }
 0xcb0   : > { %v2719_v53 = vmax.f32 %v2505_v45, 0.0  ;;  %v2721_v54 = vmax.f32 %v2546_v46, 0.0  ;;  %v2190_v45 = vrot.slane %v5852_v0, %v2157_v6  ;;  %v2544_v49 = vadd.f32 %v5890_v29, %v2170_v40  ;;  %v5122_v50 = vld [vmem:[%s5567_s29 + $0x1c0] sm:$0xff]   ;;  %v5126_v29 = vld [vmem:[%s5567_s29 + $0x2f8] sm:$0xff]   ;;  %v5148_v40 = vld [vmem:[%s5567_s29 + $0x290] sm:$0xff]  }
 0xcb1   : > { %v2507_v55 = vpop.f32.mrf.mxu1  ;;  %v2548_v56 = vpop.f32.mrf.mxu0 }
 0xcb2   : > { %v2735_v57 = vpack.c.bf16 %v2719_v53, %v2719_v53  ;;  %v2737_v58 = vpack.c.bf16 %v2721_v54, %v2721_v54  ;;  %4743 = vmatpush3.bf16.msra.mxu1 %v5099_v47  ;;  %4765 = vmatpush3.bf16.msra.mxu0 %v5100_v48  ;;  %v2503_v48 = vadd.f32 %v5888_v27, %v2162_v39  ;;  %v5124_v53 = vld [vmem:[%s5567_s29 + $0x180] sm:$0xff]   ;;  %v2720_v55 = vmax.f32 %v2544_v49, 0.0  ;;  %v5125_v27 = vld [vmem:[%s5567_s29 + $0x278] sm:$0xff]  }
 0xcb3   : > { %v5900_v61 = vpop.f32.mrf.mxu1  ;;  %v5902_v62 = vpop.f32.mrf.mxu0  ;;  %4744 = vmatprep.subr.bf16.mxu1 %v5101_v51  ;;  %4766 = vmatprep.subr.bf16.mxu0 %v5102_v52  ;;  %v5123_v52 = vld [vmem:[%s5567_s29 + $0x100] sm:$0xff]   ;;  %v2178_v39 = vrot.slane %v5852_v0, %v2145_v2  ;;  %v2206_v2 = vrot.slane %v5852_v0, %v2173_v21 }
 0xcb4   : > { %3889 = vmatprep.mubr.bf16.mxu1 %v2735_v57  ;;  %3929 = vmatprep.mubr.bf16.mxu0 %v2737_v58  ;;  %v2718_v54 = vmax.f32 %v2503_v48, 0.0  ;;  %v5127_v58 = vld [vmem:[%s5567_s29 + $0x238] sm:$0xff]  }
 0xcb5   : > { %v2586_v9 = vpop.f32.mrf.mxu1  ;;  %v2627_v10 = vpop.f32.mrf.mxu0 }
 0xcb6   : > { %4745 = vmatpush3.bf16.msra.mxu1 %v5103_v59  ;;  %4767 = vmatpush3.bf16.msra.mxu0 %v5104_v60  ;;  %v2587_v51 = vadd.f32 %v2586_v9, %v2182_v44  ;;  %v2628_v6 = vadd.f32 %v2627_v10, %v2190_v45  ;;  %v2734_v59 = vpack.c.bf16 %v2718_v54, %v2718_v54  ;;  %v5129_v9 = vld [vmem:[%s5567_s29 + $0x270] sm:$0xff]   ;;  %v5151_v44 = vld [vmem:[%s5567_s29 + $0x208] sm:$0xff]  }
 0xcb7   : > { %v2588_v15 = vpop.f32.mrf.mxu1  ;;  %v2629_v16 = vpop.f32.mrf.mxu0  ;;  %4746 = vmatprep.subr.bf16.mxu1 %v5105_v7  ;;  %4768 = vmatprep.subr.bf16.mxu0 %v5106_v8  ;;  %v2736_v60 = vpack.c.bf16 %v2720_v55, %v2720_v55  ;;  %v5128_v7 = vld [vmem:[%s5567_s29 + $0x2b8] sm:$0xff]   ;;  %v5130_v10 = vld [vmem:[%s5567_s29 + $0x2f0] sm:$0xff]   ;;  %v2585_v45 = vadd.f32 %v5900_v61, %v2178_v39  ;;  %v5156_v61 = vld [vmem:[%s5567_s29 + $0x280] sm:$0xff]  }
 0xcb8   : > { %v2723_v56 = vmax.f32 %v2587_v51, 0.0  ;;  %v2725_v57 = vmax.f32 %v2628_v6, 0.0  ;;  %v5133_v15 = vld [vmem:[%s5567_s29 + $0x268] sm:$0xff]   ;;  %v5161_v6 = vld [vmem:[%s5567_s29 + $0x370] sm:$0xff]  }
 0xcb9   : > { %v2589_v22 = vpop.f32.mrf.mxu1  ;;  %v2630_v23 = vpop.f32.mrf.mxu0  ;;  %v5134_v16 = vld [vmem:[%s5567_s29 + $0x2e8] sm:$0xff]   ;;  %v2722_v21 = vmax.f32 %v2585_v45, 0.0  ;;  %v5163_v55 = vld [vmem:[%s5567_s29 + $0x330] sm:$0xff]  }
 0xcba   : > { %4747 = vmatpush3.bf16.msra.mxu1 %v5107_v12  ;;  %4769 = vmatpush3.bf16.msra.mxu0 %v5108_v13  ;;  %v2739_v8 = vpack.c.bf16 %v2723_v56, %v2723_v56  ;;  %v2741_v11 = vpack.c.bf16 %v2725_v57, %v2725_v57  ;;  %v5131_v12 = vld [vmem:[%s5567_s29 + $0x230] sm:$0xff]   ;;  %v5138_v22 = vld [vmem:[%s5567_s29 + $0x2e0] sm:$0xff]   ;;  %v5166_v56 = vld [vmem:[%s5567_s29 + $0x3e8] sm:$0xff]  }
 0xcbb   : > { %v2666_v26 = vpop.f32.mrf.mxu1  ;;  %v2707_v28 = vpop.f32.mrf.mxu0  ;;  %4748 = vmatprep.subr.bf16.mxu1 %v5109_v17  ;;  %4770 = vmatprep.subr.bf16.mxu0 %v5110_v19  ;;  %v5132_v13 = vld [vmem:[%s5567_s29 + $0x2b0] sm:$0xff]   ;;  %v5135_v17 = vld [vmem:[%s5567_s29 + $0x228] sm:$0xff]   ;;  %v5139_v23 = vld [vmem:[%s5567_s29 + $0x220] sm:$0xff]  }
 0xcbc   : > { %v5916_v32 = vadd.f32 %v2666_v26, %v2194_v20  ;;  %v5919_v33 = vadd.f32 %v2707_v28, %v5857_v1  ;;  %v5117_v1 = vld [vmem:[%s5567_s29 + $0x148] sm:$0xff]   ;;  %v5137_v20 = vld [vmem:[%s5567_s29 + $0x260] sm:$0xff]   ;;  %v5142_v26 = vld [vmem:[%s5567_s29 + $0x2d8] sm:$0xff]  }
 0xcbd   : > { %v5921_v34 = vpop.f32.mrf.mxu1  ;;  %v5923_v35 = vpop.f32.mrf.mxu0  ;;  %v5136_v19 = vld [vmem:[%s5567_s29 + $0x2a8] sm:$0xff]   ;;  %v5143_v28 = vld [vmem:[%s5567_s29 + $0x218] sm:$0xff]  }
 0xcbe   : > { %4749 = vmatpush3.bf16.msra.mxu1 %v5111_v24  ;;  %4771 = vmatpush3.bf16.msra.mxu0 %v5112_v25  ;;  %v5140_v24 = vld [vmem:[%s5567_s29 + $0x2a0] sm:$0xff]   ;;  %v5141_v25 = vld [vmem:[%s5567_s29 + $0x258] sm:$0xff]   ;;  %v5167_v57 = vld [vmem:[%s5567_s29 + $0x328] sm:$0xff]  }
 0xcbf   : > { %v2670_v41 = vpop.f32.mrf.mxu1  ;;  %v2711_v42 = vpop.f32.mrf.mxu0  ;;  %4750 = vmatprep.subr.bf16.mxu1 %v5113_v30  ;;  %4772 = vmatprep.subr.bf16.mxu0 %v5114_v31  ;;  %v5144_v30 = vld [vmem:[%s5567_s29 + $0x298] sm:$0xff]   ;;  %v5145_v31 = vld [vmem:[%s5567_s29 + $0x250] sm:$0xff]  }
 0xcc0   : > { %v5149_v41 = vld [vmem:[%s5567_s29 + $0x248] sm:$0xff]   ;;  %v2186_v42 = vrot.slane %v5852_v0, %v2153_v3 }
 0xcc1   : > { %v2671_v46 = vpop.f32.mrf.mxu1  ;;  %v2712_v47 = vpop.f32.mrf.mxu0  ;;  %v5152_v3 = vld [vmem:[%s5567_s29 + $0x288] sm:$0xff]  }
 0xcc2   : > { %4751 = vmatpush3.bf16.msra.mxu1 %v5115_v36  ;;  %4773 = vmatpush3.bf16.msra.mxu0 %v5116_v38  ;;  %v5146_v36 = vld [vmem:[%s5567_s29 + $0x2d0] sm:$0xff]   ;;  %v5153_v46 = vld [vmem:[%s5567_s29 + $0x240] sm:$0xff]   ;;  %v2626_v47 = vadd.f32 %v5902_v62, %v2186_v42  ;;  %v5158_v62 = vld [vmem:[%s5567_s29 + $0x3f8] sm:$0xff]  }
 0xcc3   : > { %4752 = vmatprep.subr.bf16.mxu1 %v5117_v1  ;;  %4774 = vmatprep.subr.bf16.mxu0 %v5118_v43  ;;  %v5147_v38 = vld [vmem:[%s5567_s29 + $0x210] sm:$0xff]   ;;  %v5150_v1 = vld [vmem:[%s5567_s29 + $0x2c8] sm:$0xff]   ;;  %v2198_v43 = vrot.slane %v5852_v0, %v2165_v18  ;;  %v2710_v0 = vadd.f32 %v5923_v35, %v2206_v2  ;;  %v5155_v18 = vld [vmem:[%s5567_s29 + $0x200] sm:$0xff]  }
 0xcc4   : > { %v2724_v48 = vmax.f32 %v2626_v47, 0.0  ;;  %v5160_v35 = vld [vmem:[%s5567_s29 + $0x3b8] sm:$0xff]  }
 0xcc5   : > { %v2669_v37 = vadd.f32 %v5921_v34, %v2198_v43  ;;  %v5159_v34 = vld [vmem:[%s5567_s29 + $0x338] sm:$0xff]  }
 0xcc6   : > { %4753 = vmatpush3.bf16.msra.mxu1 %v5119_v63  ;;  %4775 = vmatpush3.bf16.msra.mxu0 %v5120_v4  ;;  %v5154_v63 = vld [vmem:[%s5567_s29 + $0x2c0] sm:$0xff]   ;;  %v5157_v4 = vld [vmem:[%s5567_s29 + $0x378] sm:$0xff]   ;;  %v2740_v51 = vpack.c.bf16 %v2724_v48, %v2724_v48 }
 0xcc7   : > { %4754 = vmatprep.subr.bf16.mxu1 %v5121_v5  ;;  %4776 = vmatprep.subr.bf16.mxu0 %v5122_v50  ;;  %v2727_v49 = vmax.f32 %v2669_v37, 0.0  ;;  %v2729_v5 = vmax.f32 %v2710_v0, 0.0  ;;  %v2738_v50 = vpack.c.bf16 %v2722_v21, %v2722_v21 }
 0xcc9   : > { %v2745_v54 = vpack.c.bf16 %v2729_v5, %v2729_v5 }
 0xcca   : > { %4755 = vmatpush3.bf16.msra.mxu1 %v5123_v52  ;;  %4777 = vmatpush3.bf16.msra.mxu0 %v5124_v53  ;;  %v2743_v52 = vpack.c.bf16 %v2727_v49, %v2727_v49  ;;  %v5162_v53 = vld [vmem:[%s5567_s29 + $0x3f0] sm:$0xff]  }
 0xccb   : > { %4784 = vmatprep.subr.bf16.mxu1 %v5125_v27  ;;  %4806 = vmatprep.subr.bf16.mxu0 %v5126_v29  ;;  %v5164_v27 = vld [vmem:[%s5567_s29 + $0x3b0] sm:$0xff]   ;;  %v5165_v29 = vld [vmem:[%s5567_s29 + $0x368] sm:$0xff]  }
 0xccd   : > { %3890 = vmatmul.mubr.bf16.vlgmr.msra.gmra.mxu1 %v2734_v59  ;;  %3930 = vmatmul.mubr.bf16.vlgmr.msra.gmra.mxu0 %v2736_v60  ;;  %v5169_v59 = vld [vmem:[%s5567_s29 + $0x360] sm:$0xff]  }
 0xcce   : > { %4785 = vmatpush3.bf16.msra.mxu1 %v5127_v58  ;;  %3969 = vmatprep.mubr.bf16.mxu1 %v2739_v8  ;;  %v5168_v58 = vld [vmem:[%s5567_s29 + $0x3a8] sm:$0xff]   ;;  %v5170_v60 = vld [vmem:[%s5567_s29 + $0x3e0] sm:$0xff]  }
 0xccf   : > { %4807 = vmatpush3.bf16.msra.mxu0 %v5128_v7  ;;  %4009 = vmatprep.mubr.bf16.mxu0 %v2741_v11  ;;  %v5171_v7 = vld [vmem:[%s5567_s29 + $0x320] sm:$0xff]   ;;  %v5175_v11 = vld [vmem:[%s5567_s29 + $0x318] sm:$0xff]  }
 0xcd0   : > { %4786 = vmatprep.subr.bf16.mxu1 %v5129_v9  ;;  %4808 = vmatprep.subr.bf16.mxu0 %v5130_v10  ;;  %v5172_v8 = vld [vmem:[%s5567_s29 + $0x3a0] sm:$0xff]   ;;  %v5173_v9 = vld [vmem:[%s5567_s29 + $0x358] sm:$0xff]  }
 0xcd1   : > { %v5174_v10 = vld [vmem:[%s5567_s29 + $0x3d8] sm:$0xff]  }
 0xcd2   : > { %4787 = vmatpush3.bf16.msra.mxu1 %v5131_v12  ;;  %v5176_v12 = vld [vmem:[%s5567_s29 + $0x398] sm:$0xff]  }
 0xcd3   : > { %4809 = vmatpush3.bf16.msra.mxu0 %v5132_v13  ;;  %4788 = vmatprep.subr.bf16.mxu1 %v5133_v15  ;;  %v5177_v13 = vld [vmem:[%s5567_s29 + $0x350] sm:$0xff]  }
 0xcd4   : > { %4810 = vmatprep.subr.bf16.mxu0 %v5134_v16  ;;  %v5178_v15 = vld [vmem:[%s5567_s29 + $0x3d0] sm:$0xff]  }
 0xcd5   : > { %v5179_v16 = vld [vmem:[%s5567_s29 + $0x310] sm:$0xff]  }
 0xcd6   : > { %4789 = vmatpush3.bf16.msra.mxu1 %v5135_v17  ;;  %v5180_v17 = vld [vmem:[%s5567_s29 + $0x390] sm:$0xff]  }
 0xcd7   : > { %4811 = vmatpush3.bf16.msra.mxu0 %v5136_v19  ;;  %4790 = vmatprep.subr.bf16.mxu1 %v5137_v20  ;;  %v5181_v19 = vld [vmem:[%s5567_s29 + $0x348] sm:$0xff]  }
 0xcd8   : > { %4812 = vmatprep.subr.bf16.mxu0 %v5138_v22  ;;  %v5182_v20 = vld [vmem:[%s5567_s29 + $0x3c8] sm:$0xff]  }
 0xcd9   : > { %v5183_v22 = vld [vmem:[%s5567_s29 + $0x308] sm:$0xff]  }
 0xcda   : > { %4791 = vmatpush3.bf16.msra.mxu1 %v5139_v23  ;;  %v5184_v23 = vld [vmem:[%s5567_s29 + $0x388] sm:$0xff]  }
 0xcdb   : > { %4813 = vmatpush3.bf16.msra.mxu0 %v5140_v24  ;;  %4792 = vmatprep.subr.bf16.mxu1 %v5141_v25  ;;  %v5185_v24 = vld [vmem:[%s5567_s29 + $0x340] sm:$0xff]  }
 0xcdc   : > { %4814 = vmatprep.subr.bf16.mxu0 %v5142_v26  ;;  %v5186_v25 = vld [vmem:[%s5567_s29 + $0x3c0] sm:$0xff]  }
 0xcdd   : > { %v5187_v26 = vld [vmem:[%s5567_s29 + $0x300] sm:$0xff]  }
 0xcde   : > { %4793 = vmatpush3.bf16.msra.mxu1 %v5143_v28  ;;  %v2726_v28 = vmax.f32 %v5916_v32, 0.0 }
 0xcdf   : > { %4815 = vmatpush3.bf16.msra.mxu0 %v5144_v30  ;;  %4794 = vmatprep.subr.bf16.mxu1 %v5145_v31  ;;  %v5188_v30 = vld [vmem:[%s5567_s29 + $0x380] sm:$0xff]   ;;  %v2728_v31 = vmax.f32 %v5919_v33, 0.0 }
 0xce0   : > { %4816 = vmatprep.subr.bf16.mxu0 %v5146_v36  ;;  %v2742_v36 = vpack.c.bf16 %v2726_v28, %v2726_v28 }
 0xce2   : > { %4795 = vmatpush3.bf16.msra.mxu1 %v5147_v38  ;;  %v2744_v38 = vpack.c.bf16 %v2728_v31, %v2728_v31 }
 0xce3   : > { %4817 = vmatpush3.bf16.msra.mxu0 %v5148_v40  ;;  %4796 = vmatprep.subr.bf16.mxu1 %v5149_v41  ;;  %v4513_v41 = vld [vmem:[%s920_s26] ss:$0 sm:$0xff] }
 0xce4   : > { %4818 = vmatprep.subr.bf16.mxu0 %v5150_v1 }
 0xce6   : > { %4797 = vmatpush3.bf16.msra.mxu1 %v5151_v44 }
 0xce7   : > { %4819 = vmatpush3.bf16.msra.mxu0 %v5152_v3  ;;  %4798 = vmatprep.subr.bf16.mxu1 %v5153_v46 }
 0xce8   : > { %4820 = vmatprep.subr.bf16.mxu0 %v5154_v63 }
 0xcea   : > { %4799 = vmatpush3.bf16.msra.mxu1 %v5155_v18 }
 0xceb   : > { %4821 = vmatpush3.bf16.msra.mxu0 %v5156_v61  ;;  %4828 = vmatprep.subr.bf16.mxu1 %v5157_v4 }
 0xcec   : > { %4850 = vmatprep.subr.bf16.mxu0 %v5158_v62 }
 0xced   : > { %3970 = vmatmul.mubr.bf16.vlgmr.msra.gmra.mxu1 %v2738_v50 }
 0xcee   : > { %4010 = vmatmul.mubr.bf16.vlgmr.msra.gmra.mxu0 %v2740_v51  ;;  %4829 = vmatpush3.bf16.msra.mxu1 %v5159_v34 }
 0xcef   : > { %4049 = vmatprep.mubr.bf16.mxu1 %v2743_v52  ;;  %4851 = vmatpush3.bf16.msra.mxu0 %v5160_v35 }
 0xcf0   : > { %4089 = vmatprep.mubr.bf16.mxu0 %v2745_v54  ;;  %4830 = vmatprep.subr.bf16.mxu1 %v5161_v6 }
 0xcf1   : > { %4852 = vmatprep.subr.bf16.mxu0 %v5162_v53 }
 0xcf2   : > { %4831 = vmatpush3.bf16.msra.mxu1 %v5163_v55 }
 0xcf3   : > { %4853 = vmatpush3.bf16.msra.mxu0 %v5164_v27  ;;  %4832 = vmatprep.subr.bf16.mxu1 %v5165_v29 }
 0xcf4   : > { %4854 = vmatprep.subr.bf16.mxu0 %v5166_v56 }
 0xcf6   : > { %4833 = vmatpush3.bf16.msra.mxu1 %v5167_v57 }
 0xcf7   : > { %4855 = vmatpush3.bf16.msra.mxu0 %v5168_v58  ;;  %4834 = vmatprep.subr.bf16.mxu1 %v5169_v59 }
 0xcf8   : > { %4856 = vmatprep.subr.bf16.mxu0 %v5170_v60 }
 0xcfa   : > { %4835 = vmatpush3.bf16.msra.mxu1 %v5171_v7 }
 0xcfb   : > { %4857 = vmatpush3.bf16.msra.mxu0 %v5172_v8  ;;  %4836 = vmatprep.subr.bf16.mxu1 %v5173_v9 }
 0xcfc   : > { %4858 = vmatprep.subr.bf16.mxu0 %v5174_v10 }
 0xcfe   : > { %4837 = vmatpush3.bf16.msra.mxu1 %v5175_v11 }
 0xcff   : > { %4859 = vmatpush3.bf16.msra.mxu0 %v5176_v12  ;;  %4838 = vmatprep.subr.bf16.mxu1 %v5177_v13 }
 0xd00   : > { %4860 = vmatprep.subr.bf16.mxu0 %v5178_v15 }
 0xd02   : > { %4839 = vmatpush3.bf16.msra.mxu1 %v5179_v16 }
 0xd03   : > { %4861 = vmatpush3.bf16.msra.mxu0 %v5180_v17  ;;  %4840 = vmatprep.subr.bf16.mxu1 %v5181_v19 }
 0xd04   : > { %4862 = vmatprep.subr.bf16.mxu0 %v5182_v20 }
 0xd06   : > { %4841 = vmatpush3.bf16.msra.mxu1 %v5183_v22 }
 0xd07   : > { %4863 = vmatpush3.bf16.msra.mxu0 %v5184_v23  ;;  %4842 = vmatprep.subr.bf16.mxu1 %v5185_v24 }
 0xd08   : > { %4864 = vmatprep.subr.bf16.mxu0 %v5186_v25 }
 0xd0a   : > { %4843 = vmatpush3.bf16.msra.mxu1 %v5187_v26 }
 0xd0b   : > { %4865 = vmatpush3.bf16.msra.mxu0 %v5188_v30 }
 0xd0d   : > { %4050 = vmatmul.mubr.bf16.vlgmr.msra.gmra.mxu1 %v2742_v36  ;;  %v4643_v36 = vld [vmem:[%s926_s20] ss:$0 sm:$0xff] }
 0xd0e   : > { %4090 = vmatmul.mubr.bf16.vlgmr.msra.gmra.mxu0 %v2744_v38 }
 0xd6d   : > { %v4712_v39 = vpop.f32.mrf.mxu1  ;;  %v4734_v40 = vpop.f32.mrf.mxu0 }
 0xd6f   : > { %v4713_v32 = vpop.f32.mrf.mxu1  ;;  %v4735_v42 = vpop.f32.mrf.mxu0 }
 0xd70   : > { %v4714_v1 = vadd.f32 %v4713_v32, %v4712_v39  ;;  %v4736_v43 = vadd.f32 %v4735_v42, %v4734_v40 }
 0xd71   : > { %v4715_v2 = vpop.f32.mrf.mxu1  ;;  %v4737_v33 = vpop.f32.mrf.mxu0 }
 0xd72   : > { %v3812_v44 = vadd.f32 %v4714_v1, %v4513_v41 }
 0xd73   : > { %v4716_v45 = vpop.f32.mrf.mxu1  ;;  %v4738_v3 = vpop.f32.mrf.mxu0 }
 0xd74   : > { %v3852_v46 = vadd.f32 %v4736_v43, %v3812_v44 }
 0xd8d   : > { %v4756_v47 = vpop.f32.mrf.mxu1  ;;  %v4778_v63 = vpop.f32.mrf.mxu0 }
 0xd8f   : > { %v4757_v37 = vpop.f32.mrf.mxu1  ;;  %v4779_v0 = vpop.f32.mrf.mxu0 }
 0xd90   : > { %v4758_v6 = vadd.f32 %v4757_v37, %v4756_v47  ;;  %v4780_v53 = vadd.f32 %v4779_v0, %v4778_v63 }
 0xd91   : > { %v4759_v18 = vpop.f32.mrf.mxu1  ;;  %v4781_v21 = vpop.f32.mrf.mxu0 }
 0xd92   : > { %v3892_v52 = vadd.f32 %v4758_v6, %v3852_v46 }
 0xd93   : > { %v4760_v61 = vpop.f32.mrf.mxu1  ;;  %v4782_v4 = vpop.f32.mrf.mxu0 }
 0xd94   : > { %v3932_v55 = vadd.f32 %v4780_v53, %v3892_v52 }
 0xdad   : > { %v4800_v48 = vpop.f32.mrf.mxu1 }
 0xdae   : > { %v4822_v62 = vpop.f32.mrf.mxu0 }
 0xdaf   : > { %v4801_v49 = vpop.f32.mrf.mxu1 }
 0xdb0   : > { %v4823_v5 = vpop.f32.mrf.mxu0  ;;  %v4802_v54 = vadd.f32 %v4801_v49, %v4800_v48 }
 0xdb1   : > { %v4803_v34 = vpop.f32.mrf.mxu1  ;;  %v4824_v56 = vadd.f32 %v4823_v5, %v4822_v62 }
 0xdb2   : > { %v4825_v50 = vpop.f32.mrf.mxu0  ;;  %v3972_v27 = vadd.f32 %v4802_v54, %v3932_v55 }
 0xdb3   : > { %v4804_v35 = vpop.f32.mrf.mxu1 }
 0xdb4   : > { %v4826_v51 = vpop.f32.mrf.mxu0  ;;  %v4012_v59 = vadd.f32 %v4824_v56, %v3972_v27 }
 0xdcd   : > { %v4844_v29 = vpop.f32.mrf.mxu1 }
 0xdce   : > { %v4866_v57 = vpop.f32.mrf.mxu0 }
 0xdcf   : > { %v4845_v58 = vpop.f32.mrf.mxu1 }
 0xdd0   : > { %v4846_v60 = vadd.f32 %v4845_v58, %v4844_v29  ;;  %v4867_v7 = vpop.f32.mrf.mxu0 }
 0xdd1   : > { %v4847_v8 = vpop.f32.mrf.mxu1  ;;  %v4868_v10 = vadd.f32 %v4867_v7, %v4866_v57 }
 0xdd2   : > { %v4052_v9 = vadd.f32 %v4846_v60, %v4012_v59  ;;  %v4869_v11 = vpop.f32.mrf.mxu0 }
 0xdd3   : > { %v4848_v12 = vpop.f32.mrf.mxu1 }
 0xdd4   : > { %v4092_v13 = vadd.f32 %v4868_v10, %v4052_v9  ;;  %v4870_v15 = vpop.f32.mrf.mxu0 }
 0xdd6   : > { %v4097_v16 = vadd.f32 %v4092_v13, %v5770_v14  ;;  %v4642_v14 = vld [vmem:[%s923_s30] ss:$0 sm:$0xff] }
 0xdd8   : > { %v4100_v17 = vsel %vm1044_vm4, %v4097_v16, 0.0 }
 0xdd9   : > { %4101 = vadd.xlane.f32.xlu0 %v4100_v17 }
 0xe62   : > { %v4102_v19 = vpop.xlane.xlu0 %4101 }
 0xe63   : > { %v4103_v20 = vmul.f32 0.03125, %v4102_v19 }
 0xe65   : > { %v4104_v22 = vsub.f32 %v4097_v16, %v4103_v20 }
 0xe67   : > { %v4105_v23 = vmul.f32 %v4104_v22, %v4104_v22 }
 0xe69   : > { %v4106_v24 = vsel %vm1044_vm4, %v4105_v23, 0.0 }
 0xe6a   : > { %4107 = vadd.xlane.f32.xlu0 %v4106_v24 }
 0xef3   : > { %v4108_v25 = vpop.xlane.xlu0 %4107 }
 0xef4   : > { %v4109_v26 = vmul.f32 0.03125, %v4108_v25 }
 0xef6   : > { %v4110_v28 = vadd.f32 1e-05, %v4109_v26 }
 0xef8   : > { %5207 = vrsqrt.f32 %v4110_v28 }
 0xf05   : > { %v5208_v30 = vpop.eup %5207 }
 0xf06   : > { %v4112_v31 = vmul.f32 %v5208_v30, %v4104_v22  ;;  %4130 = sbr.rel (%p4644_p1) target bundleno = 3853 (0xf0d), region = 112 }
 0xf08   : > { %v4119_v38 = vmul.f32 %v4642_v14, %v4112_v31 }
 0xf0a   : > { %v4126_v39 = vadd.f32 %v4643_v36, %v4119_v38 }
 0xf0c   : > { %4131 = vst.msk [vmem:[%s5581_s6] sm:$0xff] %vm1044_vm4, %v4126_v39 }
 0xf0d PF: > { %s6207_s23 = sld [smem:[#allocation8_spill]] }
 0xf13   : > { %p4645_p2 = scmp.ne.s32.totalorder %s6207_s23, 1 }
 0xf14   : > { %s6208_s20 = sld [smem:[#allocation33_spill]] (!%p4645_p2) }
 0xf15   : > { %4135 = sbr.rel (%p4645_p2) target bundleno = 4175 (0x104f), region = 116  ;;  %s6209_s27 = sld [smem:[#allocation34_spill]] (!%p4645_p2) }
 0xf1a   : > { %v4138_v40 = vsel %vm1044_vm4, %v4126_v39, 0.0  ;;  %v4646_v3 = vld [vmem:[%s6208_s20] ss:$0 sm:$0xff] }
 0xf1b   : > { %4139 = vadd.xlane.f32.xlu0 %v4138_v40  ;;  %v4647_v47 = vld [vmem:[%s6209_s27] ss:$0 sm:$0xff] }
 0xfa4   : > { %v4140_v41 = vpop.xlane.xlu0 %4139 }
 0xfa5   : > { %v4141_v32 = vmul.f32 0.03125, %v4140_v41 }
 0xfa7   : > { %v4142_v42 = vsub.f32 %v4126_v39, %v4141_v32 }
 0xfa9   : > { %v4143_v1 = vmul.f32 %v4142_v42, %v4142_v42 }
 0xfab   : > { %v4144_v43 = vsel %vm1044_vm4, %v4143_v1, 0.0 }
 0xfac   : > { %4145 = vadd.xlane.f32.xlu0 %v4144_v43 }
0x1035   : > { %v4146_v2 = vpop.xlane.xlu0 %4145 }
0x1036   : > { %v4147_v33 = vmul.f32 0.03125, %v4146_v2 }
0x1038   : > { %v4148_v44 = vadd.f32 1e-05, %v4147_v33 }
0x103a   : > { %5209 = vrsqrt.f32 %v4148_v44 }
0x1047   : > { %v5210_v45 = vpop.eup %5209 }
0x1048   : > { %v4150_v46 = vmul.f32 %v5210_v45, %v4142_v42 }
0x104a   : > { %v4157_v63 = vmul.f32 %v4646_v3, %v4150_v46 }
0x104c   : > { %v4164_v37 = vadd.f32 %v4647_v47, %v4157_v63 }
0x104e   : > { %4165 = vst.msk [vmem:[%s5581_s6] sm:$0xff] %vm1044_vm4, %v4164_v37 }
0x104f PF: > { %s6210_s19 = sld [smem:[#allocation9_spill]]  ;;  %s4180_s9 = sshll.u32 %s5581_s6, 4  ;;  %s4181_s9 = int_to_ptr.vmem [resolvable:$true] %s4180_s9 }
0x1050   : > { %s6211_s15 = sld [smem:[#allocation6_spill]]  ;;  %s5211_s26 = scalar_lea.vmem %s4181_s9, 128 }
0x1051   : > { %s6213_s7 = sld [smem:[#allocation35_spill]]  ;;  %p5212_p4 = scmp.ne.s32.totalorder %s4181_s9, %s5211_s26 }
0x1052   : > { %s5313_s21 = smov [#allocation2]  }
0x1053   : > { %p5213_p5 = pnand %p5212_p4, %p5473_p3  ;;  %s5215_s28 = sshll.u32 %s5313_s21, 4  ;;  %s5216_s28 = int_to_ptr.vmem [resolvable:$false] %s5215_s28 }
0x1054   : > { %s5217_s4 = scalar_lea.vmem %s5216_s28, 256  ;;  %p5218_p7 = scmp.lt.s32.totalorder %s4181_s9, %s5216_s28 }
0x1055   : > { %s4649_s18 = sshll.u32 %s6210_s19, 7  ;;  %p5214_p6 = pneg %p5213_p5 }
0x1056   : > { %s6214_s25 = sand.u32 1, %s6211_s15   ;;  %p5219_p8 = scmp.lt.s32.totalorder %s5217_s4, %s5211_s26 }
0x1057   : > { %s4178_s14 = scalar_lea.hbm %s6213_s7, %s4649_s18  ;;  %s4167_s29 = scalar_lea.sflag [#allocation3], %s6214_s25 }
0x1058   : > { %p5220_p10 = por %p5219_p8, %p5218_p7 }
0x105a   : > { %p5221_p11 = pnand %p5220_p10, %p5214_p6 }
0x105c   : > { %5224 = shalt.err (!%p5221_p11)
}
0x105d   : > { %s5225_s5 = scalar_lea.hbm %s4178_s14, 128  ;;  %s5229_s1 = scalar_lea.hbm %s6213_s7, 256 }
0x105e   : > { %p5226_p12 = scmp.ne.s32.totalorder %s4178_s14, %s5225_s5  ;;  %p5230_p1 = scmp.lt.s32.totalorder %s4178_s14, %s6213_s7 }
0x105f   : > { %p5231_p2 = scmp.lt.s32.totalorder %s5229_s1, %s5225_s5 }
0x1060   : > { %p5227_p13 = pnand %p5226_p12, %p5473_p3 }
0x1061   : > { %p5232_p4 = por %p5231_p2, %p5230_p1 }
0x1062   : > { %p5228_p0 = pneg %p5227_p13 }
0x1064   : > { %p5233_p5 = pnand %p5232_p4, %p5228_p0 }
0x1066   : > { %5236 = shalt.err (!%p5233_p5)
}
0x1067   : > { %4972 = dma.vmem_to_hbm [thread:$0]  (%p5473_p3), %s4181_s9, 128, %s4178_s14, %s4167_s29  }
0x1068 PF: > { %s6215_s0 = sld [smem:[#allocation12_spill]] }
0x1069   : > { %s6216_s3 = sld [smem:[#allocation5_spill]] }
0x106e   : > { %p4978_p6 = scmp.ge.s32.totalorder %s6215_s0, 2 }
0x106f   : > { %s4192_s19 = sand.u32 1, %s6216_s3  }
0x1070   : > { %p4975_p7 = pnand %p4978_p6, %p5483_p9  ;;  %s4193_s15 = scalar_lea.sflag [#allocation3], %s4192_s19 }
0x1072   : > { %p4976_p8 = pneg %p4975_p7 }
0x1074   : > { %5270 = dma.done.wait (%p4976_p8), %s4193_s15, 128  }
0x1075   : > { %5272 = vsyncadd (%p4976_p8), %s4193_s15, 4294967168  ;;  %s34_s0 = sadd.s32 1, %s6215_s0   ;;  %s6218_s2 = sld [smem:[#allocation6_spill]] }
0x1076   : > { %p31_p10 = scmp.ge.s32.totalorder %s34_s0, 6   ;;  %s6219_s25 = sld [smem:[#allocation7_spill]] }
0x1077   : > { %s6220_s26 = sld [smem:[#allocation17_spill]] }
0x1078   : > { %s6221_s27 = sld [smem:[#allocation10_spill]]  ;;  %33 = sbr.rel (!%p31_p10) target bundleno = 22 (0x16), region = 199 }
0x1079   : > { %s6222_s3 = sld [smem:[#allocation11_spill]] }
0x107a   : > { %s6223_s28 = sld [smem:[#allocation13_spill]] }
0x107b   : > { %s6224_s29 = sld [smem:[#allocation15_spill]] }
0x107d   :  { %4198 = vsyncpa [#allocation3], 1 }
0x107e   :  { %4200 = vsyncpa [#allocation3 + $0x1], 1 }

</bundles_post_ra>
